<compile_context>
chip_gen: v7x
topology: tpu7x:2x2x1
jax: 0.10.0
libtpu: 0.0.40
codegen_flags: <defaults>
</compile_context>

<pallas_src>
import jax
import jax.numpy as jnp
from jax import lax
from jax.experimental import pallas as pl
from jax.experimental.pallas import tpu as pltpu

PAD = 8  # sublane-aligned row offset of the depthwise-scratch interior


def make_inverted_residual_kernel(H, W, Cin, hidden, oup, stride, use_res, B):
    Hout = (H + 2 - 3) // stride + 1
    Wout = (W + 2 - 3) // stride + 1
    WH = W * hidden

    def kernel(x_ref, w1_ref, b1_ref, wdw_ref, b2_ref, w3_ref, b3_ref,
               o_ref, pad_ref):
        mm_dtype = w1_ref.dtype
        x_flat = x_ref[...]                                   # (B, H, W*Cin) f32

        # ---- expand: 1x1 conv as block-diag matmul (MXU) + bias + ReLU6 ----
        x2d = x_flat.reshape(B * H, W * Cin).astype(mm_dtype)
        h = jnp.dot(x2d, w1_ref[...], preferred_element_type=jnp.float32)
        h = jnp.clip(h + b1_ref[...], 0.0, 6.0)               # (B*H, W*hidden)
        h3 = h.reshape(B, H, WH)                              # (B, H, W*hidden)

        # ---- depthwise 3x3 in lane-dense (rows, W*hidden) layout ----
        # Interior lives at sublane offset PAD (aligned store); only the two
        # 1-row halos that the taps actually read are zeroed (every step, so
        # the kernel is correct when the grid is sharded across cores).
        zrow = jnp.zeros((B, 1, WH), jnp.float32)
        pad_ref[:, PAD - 1:PAD, :] = zrow
        pad_ref[:, PAD + H:PAD + H + 1, :] = zrow
        pad_ref[:, PAD:PAD + H, :] = h3

        wdw = wdw_ref[...]                                    # (3,3,WH) hoisted
        # Accumulator starts at the (tiled) BN bias -> no separate "+ b2" add.
        acc = jnp.broadcast_to(b2_ref[...], (B, Hout, WH))
        for kh in range(3):
            row0 = PAD - 1 + kh
            if stride == 1:
                slab = h3 if kh == 1 else pad_ref[:, row0:row0 + Hout, :]
            else:
                # stride-2 row subsampling via strided ref load.
                slab = pad_ref[:, pl.ds(row0, Hout, stride), :]
            # centre tap (kw = 1)
            acc = acc + slab * wdw[kh, 1:2, :]
            # left neighbour (input column w-1): rotate right by `hidden`
            # lanes; the wrapped-in block is killed by zeroed weight lanes.
            acc = acc + pltpu.roll(slab, shift=hidden, axis=2) * wdw[kh, 0:1, :]
            # right neighbour (input column w+1): rotate left by `hidden`.
            acc = acc + pltpu.roll(slab, shift=WH - hidden, axis=2) * wdw[kh, 2:3, :]
        h2 = jnp.clip(acc, 0.0, 6.0)                          # (B, Hout, WH)

        # ---- project: 1x1 conv as (selection) block-diag matmul (MXU) ----
        h2m = h2.reshape(B * Hout, WH).astype(mm_dtype)
        y = jnp.dot(h2m, w3_ref[...], preferred_element_type=jnp.float32)
        y = y.reshape(B, Hout, Wout * oup) + b3_ref[...]      # lane-dense slab
        if use_res:            # wrapper guarantees stride==1 and Cin==oup
            y = y + x_flat
        o_ref[...] = y

    return kernel, Hout, Wout


def _vmem_limit_bytes():
    """Generation-aware VMEM limit (~75% of physical, conservative fallback)."""
    cap = 64 * 1024 * 1024                      # v7x has the smallest VMEM
    try:
        get_info = getattr(pltpu, "get_tpu_info", None)
        if get_info is not None:
            cap = int(getattr(get_info(), "vmem_capacity_bytes", cap))
    except Exception:
        pass
    return max(32 * 1024 * 1024, (cap * 3) // 4)


def _pick_b_tile(N, H, W, Cin, hidden, oup, Hout, Wout, mm_itemsize, vmem_limit):
    """Explicit byte accounting for the per-step working set."""
    WH = W * hidden
    weight_bytes = ((W * Cin) * WH + WH * (Wout * oup)) * mm_itemsize
    weight_bytes += 9 * WH * 4 + (2 * WH + Wout * oup) * 4
    weight_bytes *= 2                            # assume pipeline double-buffers
    x_in = H * W * Cin * 4
    y_out = Hout * Wout * oup * 4
    pad = (H + 2 * PAD) * WH * 4
    live = 3 * max(H, Hout) * WH * 4             # h / acc / rolled temporaries
    per_image = 2 * x_in + 2 * y_out + pad + live
    budget = vmem_limit - weight_bytes - (2 << 20)
    fit = max(1, budget // per_image)
    cap = max(1, -(-N // 2))                     # >=2 grid steps when N>=2 (v7x)
    return int(max(1, min(fit, cap, N)))


def inverted_residual(x, params, *, stride, use_res,
                      matmul_dtype=jnp.bfloat16, vmem_limit_bytes=None):
    """x: (N, H, W, Cin) float32 NHWC. Returns (N, Hout, Wout, oup) float32."""
    N, H, W, Cin = x.shape
    w1, s1, b1, wdw, s2, b2, w3, s3, b3 = params
    hidden = w1.shape[1]
    oup = w3.shape[1]
    if use_res:
        assert stride == 1 and Cin == oup, "residual needs stride==1 and Cin==oup"
    Hout = (H + 2 - 3) // stride + 1
    Wout = (W + 2 - 3) // stride + 1
    WH = W * hidden

    if vmem_limit_bytes is None:
        vmem_limit_bytes = _vmem_limit_bytes()

    # ---- fold eval-mode BN scales into the weights; build block-diag mats ----
    w1f = (w1 * s1).astype(jnp.float32)                   # (Cin, hidden)
    w3f = (w3 * s3).astype(jnp.float32)                   # (hidden, oup)
    eye_w = jnp.eye(W, dtype=jnp.float32)
    w1_bd = jnp.kron(eye_w, w1f).astype(matmul_dtype)     # (W*Cin, W*hidden)
    if stride == 1:
        sel = eye_w                                       # (W, Wout=W)
    else:                                                 # column subsampling
        sel = jnp.zeros((W, Wout), jnp.float32)
        sel = sel.at[jnp.arange(0, W, stride), jnp.arange(Wout)].set(1.0)
    w3_bd = jnp.kron(sel, w3f).astype(matmul_dtype)       # (W*hidden, Wout*oup)

    b1t = jnp.tile(b1, (1, W))                            # (1, W*hidden)
    b2t = jnp.tile(b2, (1, W))                            # (1, W*hidden)
    b3t = jnp.tile(b3, (1, Wout))                         # (1, Wout*oup)

    wdw_t = jnp.tile(wdw * s2.reshape(1, 1, hidden), (1, 1, W))  # (3,3,W*hidden)
    # Fold the left/right column-halo masks into the tiled weights so the
    # rolled-in wrap blocks contribute exactly zero (no in-kernel selects).
    wdw_t = wdw_t.at[:, 0, :hidden].set(0.0)
    wdw_t = wdw_t.at[:, 2, (W - 1) * hidden:].set(0.0)

    mm_itemsize = jnp.dtype(matmul_dtype).itemsize
    b_tile = _pick_b_tile(N, H, W, Cin, hidden, oup, Hout, Wout,
                          mm_itemsize, vmem_limit_bytes)
    grid_n = pl.cdiv(N, b_tile)
    n_pad = grid_n * b_tile

    x_in = x.reshape(N, H, W * Cin)                       # lane-dense view
    if n_pad != N:
        x_in = jnp.pad(x_in, ((0, n_pad - N), (0, 0), (0, 0)))

    kernel, _, _ = make_inverted_residual_kernel(
        H, W, Cin, hidden, oup, stride, use_res, b_tile)

    def full_spec(a):
        return pl.BlockSpec(a.shape, lambda n, _nd=a.ndim: (0,) * _nd)

    flops = int(n_pad * (2 * H * (W * Cin) * WH
                         + 18 * Hout * WH
                         + 2 * Hout * WH * (Wout * oup)))
    bytes_accessed = int(
        x_in.size * 4 + n_pad * Hout * Wout * oup * 4
        + w1_bd.size * mm_itemsize + w3_bd.size * mm_itemsize
        + wdw_t.size * 4 + (b1t.size + b2t.size + b3t.size) * 4)

    out = pl.pallas_call(
        kernel,
        out_shape=jax.ShapeDtypeStruct((n_pad, Hout, Wout * oup), jnp.float32),
        grid_spec=pltpu.PrefetchScalarGridSpec(
            num_scalar_prefetch=0,
            grid=(grid_n,),
            in_specs=[
                pl.BlockSpec((b_tile, H, W * Cin), lambda n: (n, 0, 0)),
                full_spec(w1_bd), full_spec(b1t),
                full_spec(wdw_t), full_spec(b2t),
                full_spec(w3_bd), full_spec(b3t),
            ],
            out_specs=pl.BlockSpec((b_tile, Hout, Wout * oup),
                                   lambda n: (n, 0, 0)),
            scratch_shapes=[
                pltpu.VMEM((b_tile, H + 2 * PAD, WH), jnp.float32)],
        ),
        compiler_params=pltpu.CompilerParams(
            dimension_semantics=("parallel",),
            vmem_limit_bytes=int(vmem_limit_bytes)),
        cost_estimate=pl.CostEstimate(flops=flops, transcendentals=0,
                                      bytes_accessed=bytes_accessed),
    )(x_in, w1_bd, b1t, wdw_t, b2t, w3_bd, b3t)

    return out[:N].reshape(N, Hout, Wout, oup)


def fold_bn(gamma, beta, mean, var, eps=1e-5):
    scale = gamma / jnp.sqrt(var + eps)
    shift = beta - mean * scale
    return scale[None, :], shift[None, :]


def make_params(key, inp, oup, expand_ratio):
    hidden = int(round(inp * expand_ratio))
    ks = jax.random.split(key, 12)
    # conv weights (PyTorch shapes -> channels-last layouts used by the kernel)
    w1 = jax.random.normal(ks[0], (inp, hidden), jnp.float32) * 0.1
    wdw = jax.random.normal(ks[1], (3, 3, hidden), jnp.float32) * 0.1
    w3 = jax.random.normal(ks[2], (hidden, oup), jnp.float32) * 0.1

    def bn(kg, kb, km, kv, c):
        gamma = jax.random.uniform(kg, (c,), jnp.float32, 0.5, 1.5)
        beta = jax.random.normal(kb, (c,), jnp.float32) * 0.1
        mean = jax.random.normal(km, (c,), jnp.float32) * 0.1
        var = jax.random.uniform(kv, (c,), jnp.float32, 0.5, 1.5)
        return fold_bn(gamma, beta, mean, var)

    s1, b1 = bn(ks[3], ks[4], ks[5], ks[6], hidden)
    s2, b2 = bn(ks[7], ks[8], ks[9], ks[10], hidden)
    kg, kb, km, kv = jax.random.split(ks[11], 4)
    s3, b3 = bn(kg, kb, km, kv, oup)
    return (w1, s1, b1, wdw, s2, b2, w3, s3, b3), hidden


def reference_forward(x, params, *, stride, use_res):
    """Pure-JAX NHWC reference of InvertedResidual (eval-mode BN)."""
    w1, s1, b1, wdw, s2, b2, w3, s3, b3 = params
    hidden = w1.shape[1]
    dn = ("NHWC", "HWIO", "NHWC")
    relu6 = lambda v: jnp.clip(v, 0.0, 6.0)
    y = lax.conv_general_dilated(x, w1[None, None], (1, 1), "VALID",
                                 dimension_numbers=dn)
    y = relu6(y * s1 + b1)
    y = lax.conv_general_dilated(y, wdw[:, :, None, :], (stride, stride),
                                 [(1, 1), (1, 1)], dimension_numbers=dn,
                                 feature_group_count=hidden)
    y = relu6(y * s2 + b2)
    y = lax.conv_general_dilated(y, w3[None, None], (1, 1), "VALID",
                                 dimension_numbers=dn)
    y = y * s3 + b3
    if use_res:
        y = y + x
    return y


if __name__ == "__main__":
    key = jax.random.PRNGKey(0)
    N, H, W = 2, 16, 16

    # (inp, oup, stride, expand_ratio, matmul_dtype, tol)
    configs = [
        (8, 8, 1, 4, jnp.float32, 1e-4),    # residual path, exact f32 check
        (8, 16, 2, 6, jnp.float32, 1e-4),   # stride-2 downsample, exact f32
        (8, 8, 1, 4, jnp.bfloat16, 5e-2),   # residual path, bf16 MXU inputs
        (8, 16, 1, 6, jnp.bfloat16, 5e-2),  # non-residual stride 1, bf16
    ]
    keys = jax.random.split(key, 2 * len(configs))
    for i, (inp, oup, stride, er, mmdt, tol) in enumerate(configs):
        use_res = (stride == 1) and (inp == oup)
        x = jax.random.normal(keys[2 * i], (N, H, W, inp), jnp.float32)  # NHWC
        params, hidden = make_params(keys[2 * i + 1], inp, oup, er)

        out = inverted_residual(x, params, stride=stride, use_res=use_res,
                                matmul_dtype=mmdt)
        out = jax.block_until_ready(out)

        ref = reference_forward(x, params, stride=stride, use_res=use_res)
        assert out.shape == ref.shape, (out.shape, ref.shape)
        err = float(jnp.max(jnp.abs(out - ref)))
        # bf16 configs use a loosened tolerance: expected MXU-input rounding,
        # not a kernel bug.
        assert jnp.allclose(out, ref, atol=tol, rtol=tol), (i, err)

    print("KERNEL_OK")
</pallas_src>

<mosaic_0001>
module attributes {stable_mosaic.version = 11 : i64} {
  func.func @kernel(%arg0: i32, %arg1: memref<1x16x128xf32, #tpu.memory_space<vmem>>, %arg2: memref<128x512xf32, #tpu.memory_space<vmem>>, %arg3: memref<1x512xf32, #tpu.memory_space<vmem>>, %arg4: memref<3x3x512xf32, #tpu.memory_space<vmem>>, %arg5: memref<1x512xf32, #tpu.memory_space<vmem>>, %arg6: memref<512x128xf32, #tpu.memory_space<vmem>>, %arg7: memref<1x128xf32, #tpu.memory_space<vmem>>, %arg8: memref<1x16x128xf32, #tpu.memory_space<vmem>>, %arg9: memref<1x32x512xf32, #tpu.memory_space<vmem>>) attributes {dimension_semantics = [#tpu.dimension_semantics<parallel>], iteration_bounds = array<i64: 2>, scalar_prefetch = 0 : i64, scratch_operands = 1 : i64, tpu.core_type = #tpu.core_type<tc>, window_params = [{transform_indices = @transform_0, window_bounds = array<i64: 1, 16, 128>}, {pipeline_mode = #tpu.pipeline_mode<synchronous>, transform_indices = @transform_1, window_bounds = array<i64: 128, 512>}, {pipeline_mode = #tpu.pipeline_mode<synchronous>, transform_indices = @transform_2, window_bounds = array<i64: 1, 512>}, {pipeline_mode = #tpu.pipeline_mode<synchronous>, transform_indices = @transform_3, window_bounds = array<i64: 3, 3, 512>}, {pipeline_mode = #tpu.pipeline_mode<synchronous>, transform_indices = @transform_4, window_bounds = array<i64: 1, 512>}, {pipeline_mode = #tpu.pipeline_mode<synchronous>, transform_indices = @transform_5, window_bounds = array<i64: 512, 128>}, {pipeline_mode = #tpu.pipeline_mode<synchronous>, transform_indices = @transform_6, window_bounds = array<i64: 1, 128>}, {transform_indices = @transform_7, window_bounds = array<i64: 1, 16, 128>}]} {
    %c0 = arith.constant 0 : index
    %c0_0 = arith.constant 0 : index
    %c0_1 = arith.constant 0 : index
    %0 = vector.load %arg1[%c0, %c0_0, %c0_1] : memref<1x16x128xf32, #tpu.memory_space<vmem>>, vector<1x16x128xf32>
    %1 = vector.shape_cast %0 : vector<1x16x128xf32> to vector<16x128xf32>
    %c0_2 = arith.constant 0 : index
    %c0_3 = arith.constant 0 : index
    %2 = vector.load %arg2[%c0_2, %c0_3] : memref<128x512xf32, #tpu.memory_space<vmem>>, vector<128x512xf32>
    %cst = arith.constant dense<0.000000e+00> : vector<16x512xf32>
    %3 = tpu.matmul %1, %2, %cst {dimension_numbers = #tpu.dot_dimension_numbers<[1], [0], [0], [1], [0, 0, 1, 1], [], []>} : vector<16x128xf32>, vector<128x512xf32>, vector<16x512xf32> -> vector<16x512xf32>
    %c0_4 = arith.constant 0 : index
    %c0_5 = arith.constant 0 : index
    %4 = vector.load %arg3[%c0_4, %c0_5] : memref<1x512xf32, #tpu.memory_space<vmem>>, vector<1x512xf32>
    %5 = vector.broadcast %4 : vector<1x512xf32> to vector<16x512xf32>
    %6 = arith.addf %3, %5 : vector<16x512xf32>
    %cst_6 = arith.constant 0.000000e+00 : f32
    %cst_7 = arith.constant 6.000000e+00 : f32
    %7 = vector.broadcast %cst_6 : f32 to vector<16x512xf32>
    %8 = arith.maximumf %7, %6 : vector<16x512xf32>
    %9 = vector.broadcast %cst_7 : f32 to vector<16x512xf32>
    %10 = arith.minimumf %9, %8 : vector<16x512xf32>
    %11 = vector.shape_cast %10 : vector<16x512xf32> to vector<1x16x512xf32>
    %cst_8 = arith.constant 0.000000e+00 : f32
    %12 = vector.broadcast %cst_8 : f32 to vector<1x1x512xf32>
    %c0_9 = arith.constant 0 : index
    %c7 = arith.constant 7 : index
    %c0_10 = arith.constant 0 : index
    %13 = vector.load %arg9[%c0_9, %c7, %c0_10] : memref<1x32x512xf32, #tpu.memory_space<vmem>>, vector<1x1x512xf32>
    tpu.vector_store %arg9[%c0_9, %c7, %c0_10], %12 {strides = array<i32>} : memref<1x32x512xf32, #tpu.memory_space<vmem>>, vector<1x1x512xf32>,
    %c0_11 = arith.constant 0 : index
    %c24 = arith.constant 24 : index
    %c0_12 = arith.constant 0 : index
    %14 = vector.load %arg9[%c0_11, %c24, %c0_12] : memref<1x32x512xf32, #tpu.memory_space<vmem>>, vector<1x1x512xf32>
    tpu.vector_store %arg9[%c0_11, %c24, %c0_12], %12 {strides = array<i32>} : memref<1x32x512xf32, #tpu.memory_space<vmem>>, vector<1x1x512xf32>,
    %c0_13 = arith.constant 0 : index
    %c8 = arith.constant 8 : index
    %c0_14 = arith.constant 0 : index
    %15 = vector.load %arg9[%c0_13, %c8, %c0_14] : memref<1x32x512xf32, #tpu.memory_space<vmem>>, vector<1x16x512xf32>
    tpu.vector_store %arg9[%c0_13, %c8, %c0_14], %11 {strides = array<i32>} : memref<1x32x512xf32, #tpu.memory_space<vmem>>, vector<1x16x512xf32>,
    %c0_15 = arith.constant 0 : index
    %c0_16 = arith.constant 0 : index
    %c0_17 = arith.constant 0 : index
    %16 = vector.load %arg4[%c0_15, %c0_16, %c0_17] : memref<3x3x512xf32, #tpu.memory_space<vmem>>, vector<3x3x512xf32>
    %c0_18 = arith.constant 0 : index
    %c0_19 = arith.constant 0 : index
    %17 = vector.load %arg5[%c0_18, %c0_19] : memref<1x512xf32, #tpu.memory_space<vmem>>, vector<1x512xf32>
    %18 = vector.shape_cast %17 : vector<1x512xf32> to vector<1x1x512xf32>
    %19 = vector.broadcast %18 : vector<1x1x512xf32> to vector<1x16x512xf32>
    %c0_20 = arith.constant 0 : index
    %c7_21 = arith.constant 7 : index
    %c0_22 = arith.constant 0 : index
    %20 = vector.load %arg9[%c0_20, %c7_21, %c0_22] : memref<1x32x512xf32, #tpu.memory_space<vmem>>, vector<1x16x512xf32>
    %21 = vector.extract_strided_slice %16 {offsets = [0, 1, 0], sizes = [1, 1, 512], strides = [1, 1, 1]} : vector<3x3x512xf32> to vector<1x1x512xf32>
    %22 = vector.shape_cast %21 : vector<1x1x512xf32> to vector<1x512xf32>
    %23 = vector.shape_cast %22 : vector<1x512xf32> to vector<1x1x512xf32>
    %24 = vector.broadcast %23 : vector<1x1x512xf32> to vector<1x16x512xf32>
    %25 = arith.mulf %20, %24 : vector<1x16x512xf32>
    %26 = arith.addf %19, %25 : vector<1x16x512xf32>
    %c32_i32 = arith.constant 32 : i32
    %27 = tpu.dynamic_rotate %20 by %c32_i32 dim 2 : vector<1x16x512xf32>, i32 -> vector<1x16x512xf32>
    %28 = vector.extract_strided_slice %16 {offsets = [0, 0, 0], sizes = [1, 1, 512], strides = [1, 1, 1]} : vector<3x3x512xf32> to vector<1x1x512xf32>
    %29 = vector.shape_cast %28 : vector<1x1x512xf32> to vector<1x512xf32>
    %30 = vector.shape_cast %29 : vector<1x512xf32> to vector<1x1x512xf32>
    %31 = vector.broadcast %30 : vector<1x1x512xf32> to vector<1x16x512xf32>
    %32 = arith.mulf %27, %31 : vector<1x16x512xf32>
    %33 = arith.addf %26, %32 : vector<1x16x512xf32>
    %c480_i32 = arith.constant 480 : i32
    %34 = tpu.dynamic_rotate %20 by %c480_i32 dim 2 : vector<1x16x512xf32>, i32 -> vector<1x16x512xf32>
    %35 = vector.extract_strided_slice %16 {offsets = [0, 2, 0], sizes = [1, 1, 512], strides = [1, 1, 1]} : vector<3x3x512xf32> to vector<1x1x512xf32>
    %36 = vector.shape_cast %35 : vector<1x1x512xf32> to vector<1x512xf32>
    %37 = vector.shape_cast %36 : vector<1x512xf32> to vector<1x1x512xf32>
    %38 = vector.broadcast %37 : vector<1x1x512xf32> to vector<1x16x512xf32>
    %39 = arith.mulf %34, %38 : vector<1x16x512xf32>
    %40 = arith.addf %33, %39 : vector<1x16x512xf32>
    %41 = vector.extract_strided_slice %16 {offsets = [1, 1, 0], sizes = [1, 1, 512], strides = [1, 1, 1]} : vector<3x3x512xf32> to vector<1x1x512xf32>
    %42 = vector.shape_cast %41 : vector<1x1x512xf32> to vector<1x512xf32>
    %43 = vector.shape_cast %42 : vector<1x512xf32> to vector<1x1x512xf32>
    %44 = vector.broadcast %43 : vector<1x1x512xf32> to vector<1x16x512xf32>
    %45 = arith.mulf %11, %44 : vector<1x16x512xf32>
    %46 = arith.addf %40, %45 : vector<1x16x512xf32>
    %c32_i32_23 = arith.constant 32 : i32
    %47 = tpu.dynamic_rotate %11 by %c32_i32_23 dim 2 : vector<1x16x512xf32>, i32 -> vector<1x16x512xf32>
    %48 = vector.extract_strided_slice %16 {offsets = [1, 0, 0], sizes = [1, 1, 512], strides = [1, 1, 1]} : vector<3x3x512xf32> to vector<1x1x512xf32>
    %49 = vector.shape_cast %48 : vector<1x1x512xf32> to vector<1x512xf32>
    %50 = vector.shape_cast %49 : vector<1x512xf32> to vector<1x1x512xf32>
    %51 = vector.broadcast %50 : vector<1x1x512xf32> to vector<1x16x512xf32>
    %52 = arith.mulf %47, %51 : vector<1x16x512xf32>
    %53 = arith.addf %46, %52 : vector<1x16x512xf32>
    %c480_i32_24 = arith.constant 480 : i32
    %54 = tpu.dynamic_rotate %11 by %c480_i32_24 dim 2 : vector<1x16x512xf32>, i32 -> vector<1x16x512xf32>
    %55 = vector.extract_strided_slice %16 {offsets = [1, 2, 0], sizes = [1, 1, 512], strides = [1, 1, 1]} : vector<3x3x512xf32> to vector<1x1x512xf32>
    %56 = vector.shape_cast %55 : vector<1x1x512xf32> to vector<1x512xf32>
    %57 = vector.shape_cast %56 : vector<1x512xf32> to vector<1x1x512xf32>
    %58 = vector.broadcast %57 : vector<1x1x512xf32> to vector<1x16x512xf32>
    %59 = arith.mulf %54, %58 : vector<1x16x512xf32>
    %60 = arith.addf %53, %59 : vector<1x16x512xf32>
    %c0_25 = arith.constant 0 : index
    %c9 = arith.constant 9 : index
    %c0_26 = arith.constant 0 : index
    %61 = vector.load %arg9[%c0_25, %c9, %c0_26] : memref<1x32x512xf32, #tpu.memory_space<vmem>>, vector<1x16x512xf32>
    %62 = vector.extract_strided_slice %16 {offsets = [2, 1, 0], sizes = [1, 1, 512], strides = [1, 1, 1]} : vector<3x3x512xf32> to vector<1x1x512xf32>
    %63 = vector.shape_cast %62 : vector<1x1x512xf32> to vector<1x512xf32>
    %64 = vector.shape_cast %63 : vector<1x512xf32> to vector<1x1x512xf32>
    %65 = vector.broadcast %64 : vector<1x1x512xf32> to vector<1x16x512xf32>
    %66 = arith.mulf %61, %65 : vector<1x16x512xf32>
    %67 = arith.addf %60, %66 : vector<1x16x512xf32>
    %c32_i32_27 = arith.constant 32 : i32
    %68 = tpu.dynamic_rotate %61 by %c32_i32_27 dim 2 : vector<1x16x512xf32>, i32 -> vector<1x16x512xf32>
    %69 = vector.extract_strided_slice %16 {offsets = [2, 0, 0], sizes = [1, 1, 512], strides = [1, 1, 1]} : vector<3x3x512xf32> to vector<1x1x512xf32>
    %70 = vector.shape_cast %69 : vector<1x1x512xf32> to vector<1x512xf32>
    %71 = vector.shape_cast %70 : vector<1x512xf32> to vector<1x1x512xf32>
    %72 = vector.broadcast %71 : vector<1x1x512xf32> to vector<1x16x512xf32>
    %73 = arith.mulf %68, %72 : vector<1x16x512xf32>
    %74 = arith.addf %67, %73 : vector<1x16x512xf32>
    %c480_i32_28 = arith.constant 480 : i32
    %75 = tpu.dynamic_rotate %61 by %c480_i32_28 dim 2 : vector<1x16x512xf32>, i32 -> vector<1x16x512xf32>
    %76 = vector.extract_strided_slice %16 {offsets = [2, 2, 0], sizes = [1, 1, 512], strides = [1, 1, 1]} : vector<3x3x512xf32> to vector<1x1x512xf32>
    %77 = vector.shape_cast %76 : vector<1x1x512xf32> to vector<1x512xf32>
    %78 = vector.shape_cast %77 : vector<1x512xf32> to vector<1x1x512xf32>
    %79 = vector.broadcast %78 : vector<1x1x512xf32> to vector<1x16x512xf32>
    %80 = arith.mulf %75, %79 : vector<1x16x512xf32>
    %81 = arith.addf %74, %80 : vector<1x16x512xf32>
    %cst_29 = arith.constant 0.000000e+00 : f32
    %cst_30 = arith.constant 6.000000e+00 : f32
    %82 = vector.broadcast %cst_29 : f32 to vector<1x16x512xf32>
    %83 = arith.maximumf %82, %81 : vector<1x16x512xf32>
    %84 = vector.broadcast %cst_30 : f32 to vector<1x16x512xf32>
    %85 = arith.minimumf %84, %83 : vector<1x16x512xf32>
    %86 = vector.shape_cast %85 : vector<1x16x512xf32> to vector<16x512xf32>
    %c0_31 = arith.constant 0 : index
    %c0_32 = arith.constant 0 : index
    %87 = vector.load %arg6[%c0_31, %c0_32] : memref<512x128xf32, #tpu.memory_space<vmem>>, vector<512x128xf32>
    %cst_33 = arith.constant dense<0.000000e+00> : vector<16x128xf32>
    %88 = tpu.matmul %86, %87, %cst_33 {dimension_numbers = #tpu.dot_dimension_numbers<[1], [0], [0], [1], [0, 0, 1, 1], [], []>} : vector<16x512xf32>, vector<512x128xf32>, vector<16x128xf32> -> vector<16x128xf32>
    %89 = vector.shape_cast %88 : vector<16x128xf32> to vector<1x16x128xf32>
    %c0_34 = arith.constant 0 : index
    %c0_35 = arith.constant 0 : index
    %90 = vector.load %arg7[%c0_34, %c0_35] : memref<1x128xf32, #tpu.memory_space<vmem>>, vector<1x128xf32>
    %91 = vector.shape_cast %90 : vector<1x128xf32> to vector<1x1x128xf32>
    %92 = vector.broadcast %91 : vector<1x1x128xf32> to vector<1x16x128xf32>
    %93 = arith.addf %89, %92 : vector<1x16x128xf32>
    %94 = arith.addf %93, %0 : vector<1x16x128xf32>
    %c0_36 = arith.constant 0 : index
    %c0_37 = arith.constant 0 : index
    %c0_38 = arith.constant 0 : index
    %95 = vector.load %arg8[%c0_36, %c0_37, %c0_38] : memref<1x16x128xf32, #tpu.memory_space<vmem>>, vector<1x16x128xf32>
    tpu.vector_store %arg8[%c0_36, %c0_37, %c0_38], %94 {strides = array<i32>} : memref<1x16x128xf32, #tpu.memory_space<vmem>>, vector<1x16x128xf32>,
    return
  }
  func.func @transform_0(%arg0: i32) -> (i32, i32, i32) {
    %c0_i32 = arith.constant 0 : i32
    %c0_i32_0 = arith.constant 0 : i32
    %c0_i32_1 = arith.constant 0 : i32
    return %arg0, %c0_i32, %c0_i32_0 : i32, i32, i32
  }
  func.func @transform_1(%arg0: i32) -> (i32, i32) {
    %c0_i32 = arith.constant 0 : i32
    %c0_i32_0 = arith.constant 0 : i32
    %c0_i32_1 = arith.constant 0 : i32
    return %c0_i32, %c0_i32_0 : i32, i32
  }
  func.func @transform_2(%arg0: i32) -> (i32, i32) {
    %c0_i32 = arith.constant 0 : i32
    %c0_i32_0 = arith.constant 0 : i32
    %c0_i32_1 = arith.constant 0 : i32
    return %c0_i32, %c0_i32_0 : i32, i32
  }
  func.func @transform_3(%arg0: i32) -> (i32, i32, i32) {
    %c0_i32 = arith.constant 0 : i32
    %c0_i32_0 = arith.constant 0 : i32
    %c0_i32_1 = arith.constant 0 : i32
    %c0_i32_2 = arith.constant 0 : i32
    return %c0_i32, %c0_i32_0, %c0_i32_1 : i32, i32, i32
  }
  func.func @transform_4(%arg0: i32) -> (i32, i32) {
    %c0_i32 = arith.constant 0 : i32
    %c0_i32_0 = arith.constant 0 : i32
    %c0_i32_1 = arith.constant 0 : i32
    return %c0_i32, %c0_i32_0 : i32, i32
  }
  func.func @transform_5(%arg0: i32) -> (i32, i32) {
    %c0_i32 = arith.constant 0 : i32
    %c0_i32_0 = arith.constant 0 : i32
    %c0_i32_1 = arith.constant 0 : i32
    return %c0_i32, %c0_i32_0 : i32, i32
  }
  func.func @transform_6(%arg0: i32) -> (i32, i32) {
    %c0_i32 = arith.constant 0 : i32
    %c0_i32_0 = arith.constant 0 : i32
    %c0_i32_1 = arith.constant 0 : i32
    return %c0_i32, %c0_i32_0 : i32, i32
  }
  func.func @transform_7(%arg0: i32) -> (i32, i32, i32) {
    %c0_i32 = arith.constant 0 : i32
    %c0_i32_0 = arith.constant 0 : i32
    %c0_i32_1 = arith.constant 0 : i32
    return %arg0, %c0_i32, %c0_i32_0 : i32, i32, i32
  }
}

</mosaic_0001>

<bundles_post_ra>
// kernel: tpu_custom_call.1
= control target key start
LH: loop header
LB: loop body
LE: loop exit
PB: predicated region body
PF: predicated region fallthrough
CT: control target
= control target key end

     0   :  { %s4008_s0 = inlined_call_operand.hbm [shape: f32[2,16,128], index: 0, kind: input, shape index: {}]   ;;  %s4009_s1 = inlined_call_operand.hbm [shape: f32[128,512], index: 1, kind: input, shape index: {}]   ;;  %s4010_s2 = inlined_call_operand.vmem [shape: f32[1,512], index: 2, kind: input, shape index: {}]   ;;  %s4011_s3 = inlined_call_operand.hbm [shape: f32[3,3,512], index: 3, kind: input, shape index: {}]   ;;  %s4012_s4 = inlined_call_operand.vmem [shape: f32[1,512], index: 4, kind: input, shape index: {}]   ;;  %s4013_s5 = inlined_call_operand.hbm [shape: f32[512,128], index: 5, kind: input, shape index: {}]   ;;  %s4014_s6 = inlined_call_operand.vmem [shape: f32[1,128], index: 6, kind: input, shape index: {}]   ;;  %s4015_s7 = inlined_call_operand.hbm [shape: f32[2,16,128], index: 7, kind: output, shape index: {}]  }
   0x1   :  { %4066 = sst [smem:[#allocation54_spill]] %s4009_s1 }
   0x2   :  { %12 = vsyncpa [#allocation4], 0 }
   0x3   :  { %14 = vsyncpa [#allocation4 + $0x1], 0 }
   0x4   :  { %15 = vsyncpa [#allocation7], 0 }
   0x5   :  { %16 = vsyncpa [#allocation10], 0 }
   0x6   :  { %17 = vsyncpa [#allocation5], 0 }
   0x7   :  { %19 = vsyncpa [#allocation5 + $0x1], 0  ;;  %s2658_s24 = smov 0   ;;  %s2660_s25 = smov 0  }
   0x8   :  { %s2662_s26 = smov 0   ;;  %s2664_s27 = smov 0  }
   0x9 LB: > { %s2679_s28 = sadd.s32 4294967295, %s2600_s27   ;;  %s2093_s29 = sadd.s32 4294967294, %s2600_s27   ;;  %s2600_s27 = sphi %s2664_s27, %s4219_s27   ;;  %s2596_s26 = sphi %s2662_s26, %s4218_s26   ;;  %s2592_s25 = sphi %s2660_s25, %s4217_s25   ;;  %s2588_s24 = sphi %s2658_s24, %s4216_s24  }
   0xa   : > { %p45_p0 = scmp.ne.s32.totalorder %s2592_s25, %s2588_s24  ;;  %p4016_p1 = scmp.eq.s32.totalorder %s2679_s28, 0 }
   0xb   : > { %p201_p3 = scmp.eq.s32.totalorder %s2093_s29, 1  ;;  %p2094_p5 = scmp.ge.s32.totalorder %s2600_s27, 1 }
   0xc   : > { %p2688_p4 = por %p4016_p1, %p45_p0  ;;  %p208_p7 = scmp.lt.s32.totalorder %s2600_s27, 3 }
   0xd   : > { %p2693_p6 = por %p201_p3, %p45_p0  ;;  %s2602_s10 = smov [#allocation6]  }
   0xe   : > { %s4067_s30 = scalar_select %p2688_p4, 1, 0 }
   0xf   : > { %s4068_s8 = scalar_select %p2693_p6, 1, 0 }
  0x10   : > { %p2698_p8 = pnand %p2094_p5, %p208_p7  ;;  %s220_s11 = sshll.u32 %s2602_s10, 4  ;;  %s2702_s11 = int_to_ptr.vmem [resolvable:$true] %s220_s11 }
  0x11   : > { %s2603_s13 = smov [#allocation8]   ;;  %s4071_s1 = sld [smem:[#allocation54_spill]] }
  0x12   : > { %s4069_s9 = scalar_select %p2698_p8, 1, 0 }
  0x13   : > { %p2336_p9 = pneg %p2698_p8  ;;  %s236_s14 = sshll.u32 %s2603_s13, 4  ;;  %s2713_s14 = int_to_ptr.vmem [resolvable:$true] %s236_s14 }
  0x15   : > { %p2709_p11 = pnand %p2336_p9, %p4016_p1 }
  0x17   : > { %s2412_s17 = scalar_lea.hbm %s4071_s1, 8192  ;;  %p2723_p13 = pneg %p2709_p11 }
  0x18   : > { %p2413_p12 = scmp.ne.s32.totalorder %s4071_s1, %s2412_s17  ;;  %p2419_p5 = scmp.lt.u32.totalorder %s2412_s17, %s4071_s1 }
  0x1a   : > { %p2415_p0 = pnand %p2723_p13, %p2413_p12 }
  0x1c   : > { %p2416_p3 = pneg %p2415_p0 }
  0x1e   : > { %p2421_p7 = pnand %p2419_p5, %p2416_p3 }
  0x20   : > { %2424 = shalt.err (!%p2421_p7)
}
  0x21   : > { %s2425_s23 = scalar_lea.vmem %s2702_s11, 8192  ;;  %p2433_p2 = scmp.lt.s32.totalorder %s2702_s11, %s2702_s11 }
  0x22   : > { %p2426_p9 = scmp.ne.s32.totalorder %s2702_s11, %s2425_s23  ;;  %p2434_p6 = scmp.lt.s32.totalorder %s2425_s23, %s2425_s23 }
  0x24   : > { %p2428_p10 = pnand %p2426_p9, %p2723_p13  ;;  %p2435_p12 = por %p2434_p6, %p2433_p2 }
  0x26   : > { %p2429_p1 = pneg %p2428_p10 }
  0x28   : > { %p2436_p0 = pnand %p2435_p12, %p2429_p1 }
  0x2a   : > { %2439 = shalt.err (!%p2436_p0)
}
  0x2b   : > { %s2604_s29 = smov 512   ;;  %s2605_s10 = smov 32  }
  0x2c   : > { %2339 = dma.hbm_to_vmem [thread:$0]  (!%p2709_p11), %s4071_s1, 8192, %s2702_s11, [#allocation7], %s2604_s29, %s2604_s29, %s2605_s10  }
  0x2d   : > { %s2440_s18 = scalar_lea.hbm %s4011_s3, 768 }
  0x2e   : > { %p2441_p2 = scmp.ne.s32.totalorder %s4011_s3, %s2440_s18  ;;  %p2447_p10 = scmp.lt.u32.totalorder %s2440_s18, %s4011_s3 }
  0x30   : > { %p2443_p1 = pnand %p2441_p2, %p2723_p13 }
  0x32   : > { %p2444_p6 = pneg %p2443_p1 }
  0x34   : > { %p2449_p3 = pnand %p2447_p10, %p2444_p6 }
  0x36   : > { %2452 = shalt.err (!%p2449_p3)
}
  0x37   : > { %s2453_s11 = scalar_lea.vmem %s2713_s14, 768  ;;  %p2461_p12 = scmp.lt.s32.totalorder %s2713_s14, %s2713_s14 }
  0x38   : > { %p2454_p5 = scmp.ne.s32.totalorder %s2713_s14, %s2453_s11  ;;  %p2462_p0 = scmp.lt.s32.totalorder %s2453_s11, %s2453_s11 }
  0x3a   : > { %p2456_p7 = pnand %p2454_p5, %p2723_p13  ;;  %p2463_p2 = por %p2462_p0, %p2461_p12 }
  0x3c   : > { %p2457_p9 = pneg %p2456_p7 }
  0x3e   : > { %p2464_p1 = pnand %p2463_p2, %p2457_p9 }
  0x40   : > { %2467 = shalt.err (!%p2464_p1)
}
  0x41   : > { %s2606_s29 = smov 256   ;;  %s2607_s10 = smov 16  }
  0x42   : > { %2342 = dma.hbm_to_vmem [thread:$0]  (!%p2709_p11), %s4011_s3, 768, %s2713_s14, [#allocation7], %s2606_s29, %s2606_s29, %s2607_s10  }
  0x43   : > { %s2608_s16 = smov [#allocation9]   ;;  %s2468_s21 = scalar_lea.hbm %s4013_s5, 8192 }
  0x44   : > { %s252_s17 = sshll.u32 %s2608_s16, 4  ;;  %p2469_p6 = scmp.ne.s32.totalorder %s4013_s5, %s2468_s21  ;;  %s253_s17 = int_to_ptr.vmem [resolvable:$true] %s252_s17 }
  0x45   : > { %p2475_p5 = scmp.lt.u32.totalorder %s2468_s21, %s4013_s5 }
  0x46   : > { %p2471_p10 = pnand %p2469_p6, %p2723_p13 }
  0x48   : > { %p2472_p3 = pneg %p2471_p10 }
  0x4a   : > { %p2477_p7 = pnand %p2475_p5, %p2472_p3 }
  0x4c   : > { %2480 = shalt.err (!%p2477_p7)
}
  0x4d   : > { %s2481_s14 = scalar_lea.vmem %s253_s17, 8192  ;;  %p2489_p2 = scmp.lt.s32.totalorder %s253_s17, %s253_s17 }
  0x4e   : > { %p2482_p9 = scmp.ne.s32.totalorder %s253_s17, %s2481_s14  ;;  %p2490_p1 = scmp.lt.s32.totalorder %s2481_s14, %s2481_s14 }
  0x50   : > { %p2484_p12 = pnand %p2482_p9, %p2723_p13  ;;  %p2491_p4 = por %p2490_p1, %p2489_p2 }
  0x52   : > { %p2485_p0 = pneg %p2484_p12 }
  0x54   : > { %p2492_p8 = pnand %p2491_p4, %p2485_p0 }
  0x56   : > { %2495 = shalt.err (!%p2492_p8)
}
  0x57   : > { %s2609_s29 = smov 128   ;;  %s2610_s1 = smov 8  }
  0x58   : > { %2345 = dma.hbm_to_vmem [thread:$0]  (!%p2709_p11), %s4013_s5, 8192, %s253_s17, [#allocation10], %s2609_s29, %s2609_s29, %s2610_s1  }
  0x59   : > { %s2789_s13 = sadd.s32 1, %s2600_s27   ;;  %s32_s16 = sadd.s32 1, %s2596_s26 }
  0x5a   : > { %s29_s15 = ssub.s32 %s2600_s27, %s2789_s13  ;;  %p39_p8 = scmp.ne.s32.totalorder %s2596_s26, %s2592_s25 }
  0x5b   : > { %p30_p4 = scmp.eq.s32.totalorder %s29_s15, 0  ;;  %p40_p13 = scmp.eq.s32.totalorder %s2600_s27, 0 }
  0x5c   : > { %p2357_p6 = scmp.lt.s32.totalorder %s2600_s27, 2  ;;  %p4073_p3 = scmp.eq.s32.totalorder %s2679_s28, 1 }
  0x5d   : > { %s2799_s18 = scalar_select %p30_p4, %s2596_s26, %s32_s16  }
  0x5e   : > { %p41_p10 = por %p40_p13, %p39_p8  ;;  %p2803_p5 = por %p4073_p3, %p39_p8 }
  0x5f   : > { %s269_s19 = sand.u32 1, %s2596_s26   ;;  %s2114_s21 = sshll.u32 %s2600_s27, 8 }
  0x60   : > { %s2099_s17 = sshll.u32 %s269_s19, 4  ;;  %s2812_s11 = scalar_lea.hbm %s4008_s0, %s2114_s21 }
  0x61   : > { %s273_s14 = scalar_lea.vmem [#allocation3], %s2099_s17  ;;  %p2814_p11 = pnand %p2357_p6, %p41_p10 }
  0x62   : > { %s280_s20 = sshll.u32 %s273_s14, 4  ;;  %s2820_s15 = scalar_lea.sflag [#allocation4], %s269_s19  ;;  %s2818_s20 = int_to_ptr.vmem [resolvable:$true] %s280_s20 }
  0x63   : > { %s2496_s16 = scalar_lea.hbm %s2812_s11, 256  ;;  %p2498_p9 = pneg %p2814_p11 }
  0x64   : > { %p2497_p7 = scmp.ne.s32.totalorder %s2812_s11, %s2496_s16  ;;  %s2501_s22 = scalar_lea.hbm %s4008_s0, 512 }
  0x65   : > { %p2502_p2 = scmp.lt.u32.totalorder %s2812_s11, %s4008_s0  ;;  %p2503_p1 = scmp.lt.u32.totalorder %s2501_s22, %s2496_s16 }
  0x66   : > { %p2499_p12 = pnand %p2498_p9, %p2497_p7  ;;  %p2505_p8 = scmp.lt.u32.totalorder %s2496_s16, %s2812_s11 }
  0x67   : > { %p2504_p4 = por %p2503_p1, %p2502_p2 }
  0x68   : > { %p2500_p0 = pneg %p2499_p12 }
  0x69   : > { %p2506_p13 = por %p2505_p8, %p2504_p4 }
  0x6b   : > { %p2507_p6 = pnand %p2506_p13, %p2500_p0 }
  0x6d   : > { %2510 = shalt.err (!%p2507_p6)
}
  0x6e   : > { %s2511_s19 = scalar_lea.vmem %s2818_s20, 256  ;;  %s2611_s21 = smov [#allocation3]  }
  0x6f   : > { %p2512_p10 = scmp.ne.s32.totalorder %s2818_s20, %s2511_s19  ;;  %s2516_s17 = sshll.u32 %s2611_s21, 4  ;;  %s2517_s17 = int_to_ptr.vmem [resolvable:$false] %s2516_s17 }
  0x70   : > { %s2518_s23 = scalar_lea.vmem %s2517_s17, 512  ;;  %p2519_p12 = scmp.lt.s32.totalorder %s2818_s20, %s2517_s17 }
  0x71   : > { %p2514_p3 = pnand %p2512_p10, %p2498_p9  ;;  %p2520_p2 = scmp.lt.s32.totalorder %s2518_s23, %s2511_s19 }
  0x73   : > { %p2515_p7 = pneg %p2514_p3  ;;  %p2521_p1 = por %p2520_p2, %p2519_p12 }
  0x75   : > { %p2522_p4 = pnand %p2521_p1, %p2515_p7 }
  0x77   : > { %2525 = shalt.err (!%p2522_p4)
}
  0x78   : > { %2349 = dma.hbm_to_vmem [thread:$0]  (!%p2814_p11), %s2812_s11, 256, %s2818_s20, %s2820_s15, %s2609_s29, %s2609_s29, %s2610_s1  }
  0x79   : > { %p4076_p9 = scmp.ne.s32.totalorder %s4069_s9, 0 }
  0x7b   : > { %292 = sbr.rel (%p4076_p9) target bundleno = 882 (0x372), region = 48 }
  0x82   : > { %s2854_s16 = sand.u32 1, %s2592_s25   ;;  %p4077_p0 = scmp.ne.s32.totalorder %s4067_s30, 0 }
  0x83   : > { %s2103_s22 = sshll.u32 %s2854_s16, 4  ;;  %s295_s14 = scalar_lea.sflag [#allocation4], %s2854_s16 }
  0x84   : > { %s2860_s10 = scalar_lea.vmem [#allocation3], %s2103_s22 }
  0x85   : > { %2571 = dma.done.wait (%p4077_p0), %s295_s14, 256  }
  0x86   : > { %2573 = vsyncadd (%p4077_p0), %s295_s14, 4294967040  ;;  %p4078_p11 = scmp.eq.s32.totalorder %s2679_s28, 0 }
  0x88   : > { %2575 = dma.done.wait (%p4078_p11), [#allocation7], 8960   ;;  %p4079_p8 = pmov %p4078_p11 }
  0x8a   : > { %2577 = vsyncadd (%p4079_p8), [#allocation7], 4294958336  ;;  %p4080_p13 = pmov %p4079_p8 }
  0x8b   : > { %p4081_p6 = pmov %p4079_p8 }
  0x8c   : > { %2579 = dma.done.wait (%p4080_p13), [#allocation10], 8192  }
  0x8d   : > { %2581 = vsyncadd (%p4081_p6), [#allocation10], 4294959104  ;;  %v4019_v0 = vlaneseq  ;;  %v2612_v1 = vmov 0.0   ;;  %v344_v2 = vld [vmem:[#allocation6 + $0x8] sm:$0xff]  ;;  %v346_v4 = vld [vmem:[#allocation6 + $0x18] sm:$0xff]  ;;  %s2613_s11 = smov 32  }
  0x8e   : > { %493 = vmatprep.mubr.f32.mxu0 %v2612_v1  ;;  %570 = vmatprep.mubr.f32.mxu1 %v2612_v1  ;;  %v348_v3 = vld [vmem:[#allocation6 + $0x28] sm:$0xff]  ;;  %v350_v6 = vld [vmem:[#allocation6 + $0x38] sm:$0xff]  ;;  %v343_v7 = vld [vmem:[#allocation6] sm:$0xff]  ;;  %s2614_s20 = smov 96   ;;  %vm731_vm1 = vcmask 1040384   ;;  %vm839_vm2 = vcmask 1046528  }
  0x8f   : > { %vm601_vm0 = vcmp.lt.s32.totalorder %v4019_v0, 512  ;;  %v2192_v5 = vpack.c.bf16 %v348_v3, %v344_v2  ;;  %v347_v8 = vld [vmem:[#allocation6 + $0x20] sm:$0xff]  ;;  %v2224_v9 = vpack.c.bf16 %v350_v6, %v346_v4  ;;  %v345_v11 = vld [vmem:[#allocation6 + $0x10] sm:$0xff]  ;;  %v352_v13 = vld [vmem:[#allocation6 + $0x48] sm:$0xff]  ;;  %vm1377_vm3 = vcmask 1045504   ;;  %s340_s21 = scalar_lea.vmem [#allocation11], %s2103_s22 }
  0x90   : > { %604 = vst.msk [vmem:[#allocation2 + $0x7] ss:$8 sm:$0xf] %vm601_vm0, %v2612_v1  ;;  %607 = vst.msk [vmem:[#allocation2 + $0x60] ss:$8 sm:$0xf] %vm601_vm0, %v2612_v1  ;;  %v2194_v10 = vpack.c.bf16 %v347_v8, %v343_v7 }
  0x91   : > { %v349_v12 = vld [vmem:[#allocation6 + $0x30] sm:$0xff]  ;;  %2193 = vmatprep.subr.bf16.mxu0 %v2192_v5  ;;  %v356_v15 = vld [vmem:[#allocation6 + $0x68] sm:$0xff]  ;;  %v354_v16 = vld [vmem:[#allocation6 + $0x58] sm:$0xff]  ;;  %2225 = vmatprep.subr.bf16.mxu1 %v2224_v9  ;;  %s1991_s17 = sshll.u32 %s340_s21, 4  ;;  %s2115_s23 = sshll.u32 %s2679_s28, 8  ;;  %s3963_s17 = int_to_ptr.vmem [resolvable:$true] %s1991_s17 }
  0x92   : > { %v2226_v14 = vpack.c.bf16 %v349_v12, %v345_v11  ;;  %v358_v17 = vld [vmem:[#allocation6 + $0x78] sm:$0xff]  ;;  %2195 = vmatpush1.bf16.msra.mxu0 %v2194_v10  ;;  %v2196_v18 = vpack.c.bf16 %v356_v15, %v352_v13  ;;  %v351_v20 = vld [vmem:[#allocation6 + $0x40] sm:$0xff]  ;;  %v353_v22 = vld [vmem:[#allocation6 + $0x50] sm:$0xff]  ;;  %s3961_s9 = scalar_lea.hbm %s4015_s7, %s2115_s23  ;;  %s1978_s29 = scalar_lea.sflag [#allocation5], %s2854_s16 }
  0x93   : > { %v2228_v19 = vpack.c.bf16 %v358_v17, %v354_v16  ;;  %v355_v21 = vld [vmem:[#allocation6 + $0x60] sm:$0xff]  ;;  %v357_v24 = vld [vmem:[#allocation6 + $0x70] sm:$0xff]  ;;  %v360_v25 = vld [vmem:[#allocation6 + $0x88] sm:$0xff]  ;;  %s2526_s22 = scalar_lea.vmem %s3963_s17, 256  ;;  %s2615_s28 = smov [#allocation11]  }
  0x94   : > { %2227 = vmatpush1.bf16.msra.mxu1 %v2226_v14  ;;  %v2198_v23 = vpack.c.bf16 %v355_v21, %v351_v20  ;;  %v364_v26 = vld [vmem:[#allocation6 + $0xa8] sm:$0xff]  ;;  %2197 = vmatprep.subr.bf16.mxu0 %v2196_v18  ;;  %v2230_v27 = vpack.c.bf16 %v357_v24, %v353_v22  ;;  %v362_v29 = vld [vmem:[#allocation6 + $0x98] sm:$0xff]  ;;  %v359_v31 = vld [vmem:[#allocation6 + $0x80] sm:$0xff]  ;;  %p2527_p10 = scmp.ne.s32.totalorder %s3963_s17, %s2526_s22  ;;  %s2530_s1 = sshll.u32 %s2615_s28, 4  ;;  %s2531_s1 = int_to_ptr.vmem [resolvable:$false] %s2530_s1 }
  0x95   : > { %2229 = vmatprep.subr.bf16.mxu1 %v2228_v19  ;;  %v2200_v28 = vpack.c.bf16 %v364_v26, %v360_v25  ;;  %v366_v30 = vld [vmem:[#allocation6 + $0xb8] sm:$0xff]  ;;  %v363_v33 = vld [vmem:[#allocation6 + $0xa0] sm:$0xff]  ;;  %v361_v34 = vld [vmem:[#allocation6 + $0x90] sm:$0xff]  ;;  %p2533_p12 = scmp.lt.s32.totalorder %s3963_s17, %s2531_s1 }
  0x96   : > { %v2232_v32 = vpack.c.bf16 %v366_v30, %v362_v29  ;;  %v365_v35 = vld [vmem:[#allocation6 + $0xb0] sm:$0xff]  ;;  %2199 = vmatpush1.bf16.msra.mxu0 %v2198_v23  ;;  %v2202_v36 = vpack.c.bf16 %v363_v33, %v359_v31  ;;  %v368_v37 = vld [vmem:[#allocation6 + $0xc8] sm:$0xff]  ;;  %v370_v39 = vld [vmem:[#allocation6 + $0xd8] sm:$0xff]  ;;  %p2528_p3 = pnand %p2527_p10, %p2803_p5 }
  0x97   : > { %v372_v38 = vld [vmem:[#allocation6 + $0xe8] sm:$0xff]  ;;  %2201 = vmatprep.subr.bf16.mxu0 %v2200_v28  ;;  %v2234_v40 = vpack.c.bf16 %v365_v35, %v361_v34  ;;  %v374_v42 = vld [vmem:[#allocation6 + $0xf8] sm:$0xff]  ;;  %v367_v43 = vld [vmem:[#allocation6 + $0xc0] sm:$0xff] }
  0x98   : > { %2231 = vmatpush1.bf16.msra.mxu1 %v2230_v27  ;;  %v2204_v41 = vpack.c.bf16 %v372_v38, %v368_v37  ;;  %v371_v44 = vld [vmem:[#allocation6 + $0xe0] sm:$0xff]  ;;  %v2236_v45 = vpack.c.bf16 %v374_v42, %v370_v39  ;;  %v369_v46 = vld [vmem:[#allocation6 + $0xd0] sm:$0xff]  ;;  %v376_v48 = vld [vmem:[#allocation6 + $0x108] sm:$0xff]  ;;  %v2884_v38 = vshrl.u32 %v4019_v0, 7  ;;  %p2529_p7 = pneg %p2528_p3 }
  0x99   : > { %2233 = vmatprep.subr.bf16.mxu1 %v2232_v32  ;;  %v373_v47 = vld [vmem:[#allocation6 + $0xf0] sm:$0xff]  ;;  %v380_v49 = vld [vmem:[#allocation6 + $0x128] sm:$0xff]  ;;  %v378_v50 = vld [vmem:[#allocation6 + $0x118] sm:$0xff]  ;;  %v2206_v52 = vpack.c.bf16 %v371_v44, %v367_v43 }
  0x9a   : > { %v382_v51 = vld [vmem:[#allocation6 + $0x138] sm:$0xff]  ;;  %2203 = vmatpush1.bf16.msra.mxu0 %v2202_v36  ;;  %v2238_v53 = vpack.c.bf16 %v373_v47, %v369_v46  ;;  %v2208_v54 = vpack.c.bf16 %v380_v49, %v376_v48  ;;  %v375_v55 = vld [vmem:[#allocation6 + $0x100] sm:$0xff]  ;;  %v377_v57 = vld [vmem:[#allocation6 + $0x110] sm:$0xff]  ;;  %v2887_v39 = vsub.s32 1, %v2884_v38  ;;  %v2891_v42 = vsub.s32 5, %v2884_v38 }
  0x9b   : > { %2205 = vmatprep.subr.bf16.mxu0 %v2204_v41  ;;  %v379_v56 = vld [vmem:[#allocation6 + $0x120] sm:$0xff]  ;;  %v2240_v58 = vpack.c.bf16 %v382_v51, %v378_v50  ;;  %v381_v59 = vld [vmem:[#allocation6 + $0x130] sm:$0xff]  ;;  %v384_v60 = vld [vmem:[#allocation6 + $0x148] sm:$0xff] }
  0x9c   : > { %2235 = vmatpush1.bf16.msra.mxu1 %v2234_v40  ;;  %v388_v61 = vld [vmem:[#allocation6 + $0x168] sm:$0xff]  ;;  %v386_v62 = vld [vmem:[#allocation6 + $0x158] sm:$0xff]  ;;  %v2210_v2 = vpack.c.bf16 %v379_v56, %v375_v55  ;;  %v2242_v3 = vpack.c.bf16 %v381_v59, %v377_v57  ;;  %v383_v5 = vld [vmem:[#allocation6 + $0x140] sm:$0xff] }
  0x9d   : > { %2237 = vmatprep.subr.bf16.mxu1 %v2236_v45  ;;  %v390_v63 = vld [vmem:[#allocation6 + $0x178] sm:$0xff]  ;;  %v2212_v4 = vpack.c.bf16 %v388_v61, %v384_v60  ;;  %v387_v6 = vld [vmem:[#allocation6 + $0x160] sm:$0xff]  ;;  %v385_v7 = vld [vmem:[#allocation6 + $0x150] sm:$0xff] }
  0x9e   : > { %2207 = vmatpush1.bf16.msra.mxu0 %v2206_v52  ;;  %v2244_v8 = vpack.c.bf16 %v390_v63, %v386_v62  ;;  %v389_v9 = vld [vmem:[#allocation6 + $0x170] sm:$0xff]  ;;  %v392_v10 = vld [vmem:[#allocation6 + $0x188] sm:$0xff]  ;;  %v394_v12 = vld [vmem:[#allocation6 + $0x198] sm:$0xff]  ;;  %v2214_v14 = vpack.c.bf16 %v387_v6, %v383_v5 }
  0x9f   : > { %2209 = vmatprep.subr.bf16.mxu0 %v2208_v54  ;;  %v396_v11 = vld [vmem:[#allocation6 + $0x1a8] sm:$0xff]  ;;  %v398_v13 = vld [vmem:[#allocation6 + $0x1b8] sm:$0xff]  ;;  %v2246_v15 = vpack.c.bf16 %v389_v9, %v385_v7  ;;  %v391_v17 = vld [vmem:[#allocation6 + $0x180] sm:$0xff] }
  0xa0   : > { %2239 = vmatpush1.bf16.msra.mxu1 %v2238_v53  ;;  %v2216_v16 = vpack.c.bf16 %v396_v11, %v392_v10  ;;  %v395_v18 = vld [vmem:[#allocation6 + $0x1a0] sm:$0xff]  ;;  %v393_v19 = vld [vmem:[#allocation6 + $0x190] sm:$0xff]  ;;  %v2248_v20 = vpack.c.bf16 %v398_v13, %v394_v12  ;;  %v400_v22 = vld [vmem:[#allocation6 + $0x1c8] sm:$0xff] }
  0xa1   : > { %2241 = vmatprep.subr.bf16.mxu1 %v2240_v58  ;;  %v397_v21 = vld [vmem:[#allocation6 + $0x1b0] sm:$0xff]  ;;  %v404_v23 = vld [vmem:[#allocation6 + $0x1e8] sm:$0xff]  ;;  %v402_v24 = vld [vmem:[#allocation6 + $0x1d8] sm:$0xff]  ;;  %v2218_v26 = vpack.c.bf16 %v395_v18, %v391_v17  ;;  %v423_v17 = vsub.s32 3, %v2884_v38 }
  0xa2   : > { %2211 = vmatpush1.bf16.msra.mxu0 %v2210_v2  ;;  %v406_v25 = vld [vmem:[#allocation6 + $0x1f8] sm:$0xff]  ;;  %v2250_v27 = vpack.c.bf16 %v397_v21, %v393_v19  ;;  %v2220_v28 = vpack.c.bf16 %v404_v23, %v400_v22  ;;  %v399_v29 = vld [vmem:[#allocation6 + $0x1c0] sm:$0xff]  ;;  %v401_v32 = vld [vmem:[#allocation6 + $0x1d0] sm:$0xff] }
  0xa3   : > { %2213 = vmatprep.subr.bf16.mxu0 %v2212_v4  ;;  %v403_v30 = vld [vmem:[#allocation6 + $0x1e0] sm:$0xff]  ;;  %v2252_v31 = vpack.c.bf16 %v406_v25, %v402_v24  ;;  %v405_v33 = vld [vmem:[#allocation6 + $0x1f0] sm:$0xff]  ;;  %v342_v37 = vld [vmem:[%s2860_s10 + $0x8] sm:$0xff] }
  0xa4   : > { %2243 = vmatpush1.bf16.msra.mxu1 %v2242_v3  ;;  %v2222_v34 = vpack.c.bf16 %v403_v30, %v399_v29  ;;  %v2254_v35 = vpack.c.bf16 %v405_v33, %v401_v32  ;;  %v341_v36 = vld [vmem:[%s2860_s10] sm:$0xff]  ;;  %v2916_v52 = vld [vmem:[#allocation2 + $0x68] sm:$0x1]  ;;  %v2926_v56 = vld [vmem:[#allocation2 + $0x78] sm:$0x1] }
  0xa5   : > { %2245 = vmatprep.subr.bf16.mxu1 %v2244_v8  ;;  %v621_v40 = vld [vmem:[#allocation8 + $0x20] sm:$0x77]  ;;  %v2904_v48 = vld [vmem:[#allocation2 + $0x70] sm:$0x1]  ;;  %v2938_v61 = vld [vmem:[#allocation8 + $0x8] sm:$0x77] }
  0xa6   : > { %2215 = vmatpush1.bf16.msra.mxu0 %v2214_v14  ;;  %v1320_v41 = vrot.slane %v621_v40, %v2887_v39  ;;  %v2893_v43 = vld [vmem:[#allocation2 + $0x60] sm:$0x1]  ;;  %v1324_v47 = vrot.slane %v621_v40, %v2891_v42  ;;  %4083 = vst [vmem:[#allocation17_spill] sm:$0xff] %v2938_v61  ;;  %v670_v2 = vrot.slane %v2938_v61, %v2887_v39  ;;  %v2948_v3 = vld [vmem:[#allocation2] sm:$0x80]  ;;  %v2981_v14 = vsub.s32 0, %v2884_v38 }
  0xa7   : > { %2217 = vmatprep.subr.bf16.mxu0 %v2216_v16  ;;  %v2932_v58 = vld [vmem:[#allocation8] sm:$0x77]  ;;  %v2950_v4 = vld [vmem:[#allocation2 + $0x8] sm:$0x80]  ;;  %v2963_v8 = vld [vmem:[#allocation2 + $0x10] sm:$0x80]  ;;  %v674_v10 = vrot.slane %v2938_v61, %v2891_v42 }
  0xa8   : > { %2247 = vmatpush1.bf16.msra.mxu1 %v2246_v15  ;;  %v2896_v44 = vrot.slane %v1320_v41, %v2887_v39  ;;  %v2914_v51 = vrot.slane %v1324_v47, %v2887_v39  ;;  %4082 = vst [vmem:[#allocation16_spill] sm:$0xff] %v2932_v58  ;;  %v662_v59 = vrot.slane %v2932_v58, %v2887_v39  ;;  %v2974_v12 = vld [vmem:[#allocation2 + $0x18] sm:$0x80]  ;;  %v407_v15 = vld [vmem:[%s4010_s2] sm:$0xf]  ;;  %v2987_v16 = vsub.s32 2, %v2884_v38 }
  0xa9   : > { %2249 = vmatprep.subr.bf16.mxu1 %v2248_v20  ;;  %v666_v60 = vrot.slane %v2932_v58, %v2891_v42  ;;  %v2961_v7 = vrot.slane %v670_v2, %v2887_v39  ;;  %v2972_v11 = vrot.slane %v674_v10, %v2887_v39  ;;  %v2990_v18 = vld [vmem:[#allocation8 + $0x10] sm:$0x77]  ;;  %v412_v19 = vrot.slane %v407_v15, %v2981_v14  ;;  %v2993_v20 = vld [vmem:[#allocation8 + $0x18] sm:$0x77] }
  0xaa   : > { %2219 = vmatpush1.bf16.msra.mxu0 %v2218_v26  ;;  %v2900_v45 = vmul.f32 %v2896_v44, %v2893_v43  ;;  %v2921_v54 = vmul.f32 %v2914_v51, %v2916_v52  ;;  %v2941_v62 = vrot.slane %v662_v59, %v2887_v39  ;;  %4086 = vst [vmem:[#allocation20_spill] sm:$0xff] %v2987_v16 }
  0xab   : > { %2221 = vmatprep.subr.bf16.mxu0 %v2220_v28  ;;  %v2944_v63 = vrot.slane %v666_v60, %v2887_v39  ;;  %v2967_v9 = vmul.f32 %v2961_v7, %v2963_v8  ;;  %v2978_v13 = vmul.f32 %v2972_v11, %v2974_v12  ;;  %v416_v21 = vrot.slane %v407_v15, %v2887_v39 }
  0xac   : > { %2251 = vmatpush1.bf16.msra.mxu1 %v2250_v27  ;;  %v2954_v5 = vmul.f32 %v2941_v62, %v2948_v3  ;;  %v420_v22 = vrot.slane %v407_v15, %v2987_v16  ;;  %v994_v23 = vrot.slane %v2990_v18, %v2887_v39  ;;  %v424_v24 = vrot.slane %v407_v15, %v423_v17 }
  0xad   : > { %2253 = vmatprep.subr.bf16.mxu1 %v2252_v31  ;;  %v2958_v6 = vmul.f32 %v2944_v63, %v2950_v4  ;;  %4085 = vst [vmem:[#allocation19_spill] sm:$0xff] %v2967_v9  ;;  %v998_v26 = vrot.slane %v2990_v18, %v2891_v42  ;;  %v1002_v27 = vrot.slane %v2993_v20, %v2887_v39  ;;  %v1392_v9 = vrot.slane %v2921_v54, 2 }
  0xae   : > { %2223 = vmatpush1.bf16.msra.mxu0 %v2222_v34  ;;  %4084 = vst [vmem:[#allocation18_spill] sm:$0xff] %v2954_v5  ;;  %v1006_v31 = vrot.slane %v2993_v20, %v2891_v42 }
  0xaf   : > { %v1018_v41 = vrot.slane %v998_v26, %v2887_v39 }
  0xb0   : > { %2255 = vmatpush1.bf16.msra.mxu1 %v2254_v35  ;;  %v1026_v60 = vrot.slane %v1006_v31, %v2887_v39 }
  0xb1   : > { %494 = vmatmul.mubr.f32.vlgmr.msra.gmra.mrb[0].mxu0 %v341_v36 }
  0xb2   : > { %499 = vmatprep.mubr.f32.mxu0 %v2612_v1 }
  0xb3   : > { %571 = vmatmul.mubr.f32.vlgmr.msra.gmra.mrb[0].mxu1 %v341_v36  ;;  %v1014_v36 = vrot.slane %v994_v23, %v2887_v39  ;;  %v3020_v23 = vld [vmem:[%s4012_s4] sm:$0xf] }
  0xb4   : > { %576 = vmatprep.mubr.f32.mxu1 %v2612_v1  ;;  %v622_v1 = vld [vmem:[#allocation8 + $0x28] sm:$0x77]  ;;  %4087 = vst [vmem:[#allocation21_spill] sm:$0xff] %v3020_v23 }
  0xb5   : > { %500 = vmatmul.mubr.f32.gmra.mrb[2].mxu0 %v342_v37  ;;  %v1328_v46 = vrot.slane %v622_v1, %v2887_v39  ;;  %v1332_v53 = vrot.slane %v622_v1, %v2891_v42 }
  0xb7   : > { %577 = vmatmul.mubr.f32.gmra.mrb[2].mxu1 %v342_v37  ;;  %v2907_v49 = vrot.slane %v1328_v46, %v2887_v39  ;;  %v2924_v55 = vrot.slane %v1332_v53, %v2887_v39  ;;  %v1022_v46 = vrot.slane %v1002_v27, %v2887_v39 }
  0xb9   : > { %v2911_v50 = vmul.f32 %v2907_v49, %v2904_v48  ;;  %v2930_v57 = vmul.f32 %v2924_v55, %v2926_v56 }
 0x184   : > { %v495_v25 = vpop.f32.mrb[0].mxu0 }
 0x185   : > { %v496_v28 = vadd.f32 %v495_v25, %v412_v19  ;;  %v497_v29 = vpop.f32.mrb[1].mxu0 }
 0x186   : > { %v572_v30 = vpop.f32.mrb[0].mxu1  ;;  %v498_v32 = vadd.f32 %v497_v29, %v416_v21 }
 0x187   : > { %v573_v33 = vadd.f32 %v572_v30, %v420_v22  ;;  %v574_v34 = vpop.f32.mrb[1].mxu1  ;;  %v583_v35 = vmax.f32 %v496_v28, 0.0 }
 0x188   : > { %v575_v37 = vadd.f32 %v574_v34, %v424_v24  ;;  %v584_v40 = vmax.f32 %v498_v32, 0.0  ;;  %v501_v47 = vpop.f32.mrb[2].mxu0 }
 0x189   : > { %v585_v1 = vmax.f32 %v573_v33, 0.0  ;;  %v3010_v53 = vmin.f32 %v583_v35, 6.0  ;;  %v502_v42 = vadd.f32 %v501_v47, %v412_v19  ;;  %v503_v10 = vpop.f32.mrb[3].mxu0 }
 0x18a   : > { %v586_v59 = vmax.f32 %v575_v37, 0.0  ;;  %v578_v2 = vpop.f32.mrb[2].mxu1  ;;  %v3013_v15 = vmin.f32 %v584_v40, 6.0  ;;  %v504_v27 = vadd.f32 %v503_v10, %v416_v21  ;;  %v3046_v37 = vrot.slane %v3020_v23, %v2887_v39 }
 0x18b   : > { %v3015_v25 = vmin.f32 %v585_v1, 6.0  ;;  %v579_v26 = vadd.f32 %v578_v2, %v420_v22  ;;  %v580_v28 = vpop.f32.mrb[3].mxu1  ;;  %609 = vst [vmem:[#allocation2 + $0x20] sm:$0xff] %v3010_v53  ;;  %v3024_v29 = vmul.f32 %v1014_v36, %v3010_v53  ;;  %v587_v30 = vmax.f32 %v502_v42, 0.0  ;;  %1079 = vrot.lane.b32.xlu0 %v3010_v53, %s2613_s11 }
 0x18c   : > { %v3026_v19 = vmin.f32 %v586_v59, 6.0  ;;  %v581_v31 = vadd.f32 %v580_v28, %v424_v24  ;;  %610 = vst [vmem:[#allocation2 + $0x28] sm:$0xff] %v3013_v15  ;;  %v3032_v32 = vmul.f32 %v1018_v41, %v3013_v15  ;;  %v588_v33 = vmax.f32 %v504_v27, 0.0 }
 0x18d   : > { %611 = vst [vmem:[#allocation2 + $0x30] sm:$0xff] %v3015_v25  ;;  %v3036_v21 = vmul.f32 %v1022_v46, %v3015_v25  ;;  %v589_v22 = vmax.f32 %v579_v26, 0.0  ;;  %v3042_v34 = vmin.f32 %v587_v30, 6.0  ;;  %v3054_v47 = vmul.f32 %v2941_v62, %v3010_v53 }
 0x18e   : > { %612 = vst [vmem:[#allocation2 + $0x38] sm:$0xff] %v3026_v19  ;;  %v3040_v24 = vmul.f32 %v1026_v60, %v3026_v19  ;;  %v590_v35 = vmax.f32 %v581_v31, 0.0  ;;  %v3050_v1 = vmin.f32 %v588_v33, 6.0  ;;  %v700_v39 = vmul.f32 %v2944_v63, %v3013_v15 }
 0x18f   : > { %v3048_v40 = vmin.f32 %v589_v22, 6.0  ;;  %4088 = vst [vmem:[#allocation22_spill] sm:$0xff] %v3054_v47  ;;  %613 = vst [vmem:[#allocation2 + $0x40] sm:$0xff] %v3042_v34  ;;  %v3058_v59 = vmul.f32 %v1014_v36, %v3042_v34  ;;  %1081 = vrot.lane.b32.xlu1 %v3042_v34, %s2613_s11  ;;  %1087 = vrot.lane.b32.xlu0 %v3015_v25, %s2613_s11  ;;  %v3071_v2 = vrot.slane %v3020_v23, %v423_v17 }
 0x190   : > { %v3060_v42 = vmin.f32 %v590_v35, 6.0  ;;  %614 = vst [vmem:[#allocation2 + $0x48] sm:$0xff] %v3050_v1  ;;  %v3079_v10 = vmul.f32 %v1018_v41, %v3050_v1  ;;  %v3086_v27 = vadd.f32 %v700_v39, %v3046_v37  ;;  %v3090_v17 = vmul.f32 %v2961_v7, %v3015_v25 }
 0x191   : > { %615 = vst [vmem:[#allocation2 + $0x50] sm:$0xff] %v3048_v40  ;;  %v3075_v36 = vmul.f32 %v1022_v46, %v3048_v40  ;;  %v702_v46 = vmul.f32 %v2972_v11, %v3026_v19  ;;  %v3096_v28 = vmul.f32 %v2896_v44, %v3042_v34  ;;  %v736_v58 = vrot.slane %v3013_v15, 7 }
 0x192   : > { %616 = vst [vmem:[#allocation2 + $0x58] sm:$0xff] %v3060_v42  ;;  %v3083_v26 = vmul.f32 %v1026_v60, %v3060_v42  ;;  %4091 = vst [vmem:[#allocation25_spill] sm:$0xff] %v3086_v27  ;;  %v3098_v41 = vld [vmem:[#allocation2 + $0x20] sm:$0xfe]  ;;  %v3106_v60 = vmul.f32 %v2907_v49, %v3048_v40  ;;  %v1358_v27 = vmul.f32 %v2914_v51, %v3050_v1  ;;  %v4030_v54 = vrot.slane %v3079_v10, 1 }
 0x193   : > { %4089 = vst [vmem:[#allocation23_spill] sm:$0xff] %v3075_v36  ;;  %4092 = vst [vmem:[#allocation26_spill] sm:$0xff] %v3090_v17  ;;  %1089 = vrot.lane.b32.xlu1 %v3048_v40, %s2613_s11  ;;  %1191 = vrot.lane.b32.xlu0 %v3010_v53, %s2614_s20  ;;  %v3110_v31 = vld [vmem:[#allocation2 + $0x28] sm:$0xfe]  ;;  %v3113_v22 = vadd.f32 %v702_v46, %v3071_v2  ;;  %v3117_v33 = vmul.f32 %v2896_v44, %v3098_v41  ;;  %v1382_v23 = vrot.slane %v3096_v28, 2 }
 0x194   : > { %4090 = vst [vmem:[#allocation24_spill] sm:$0xff] %v3083_v26  ;;  %v3108_v30 = vld [vmem:[#allocation2 + $0x30] sm:$0xfe]  ;;  %v3127_v0 = vmul.f32 %v2914_v51, %v3110_v31  ;;  %v1386_v61 = vrot.slane %v3106_v60, 2  ;;  %v3190_v28 = vadd.f32 %v2958_v6, %v3046_v37  ;;  %v738_v60 = vrot.slane %v2963_v8, 7 }
 0x195   : > { %4093 = vst [vmem:[#allocation27_spill] sm:$0xff] %v3113_v22  ;;  %v3123_v39 = vmul.f32 %v2907_v49, %v3108_v30  ;;  %v3151_v47 = vld [vmem:[#allocation2 + $0x38] sm:$0xfe] }
 0x196   : > { %v3119_v35 = vld [vmem:[#allocation2 + $0x40] sm:$0x7f] }
 0x197   : > { %1193 = vrot.lane.b32.xlu1 %v3042_v34, %s2614_s20  ;;  %1199 = vrot.lane.b32.xlu0 %v3015_v25, %s2614_s20  ;;  %v3139_v46 = vmul.f32 %v2941_v62, %v3119_v35  ;;  %v3141_v49 = vld [vmem:[#allocation2 + $0x48] sm:$0x7f]  ;;  %v3161_v62 = vmul.f32 %v2924_v55, %v3151_v47 }
 0x198   : > { %v3135_v44 = vld [vmem:[#allocation2 + $0x50] sm:$0x7f]  ;;  %v704_v51 = vmul.f32 %v2944_v63, %v3141_v49  ;;  %v1360_v63 = vmul.f32 %v2924_v55, %v3060_v42  ;;  %v1396_v55 = vrot.slane %v2930_v57, 2 }
 0x199   : > { %4094 = vst [vmem:[#allocation28_spill] sm:$0xff] %v3139_v46  ;;  %v3145_v22 = vmul.f32 %v2961_v7, %v3135_v44  ;;  %v3149_v17 = vld [vmem:[#allocation2 + $0x58] sm:$0x7f]  ;;  %v732_v7 = vrot.slane %v2948_v3, 7  ;;  %v1394_v46 = vrot.slane %v2911_v50, 2  ;;  %v1384_v50 = vrot.slane %v1358_v27, 2 }
 0x19a   : > { %v706_v5 = vmul.f32 %v2972_v11, %v3149_v17  ;;  %v1390_v11 = vrot.slane %v2900_v45, 2  ;;  %v3186_v57 = vadd.f32 %v704_v51, %v3046_v37  ;;  %v4029_v3 = vrot.slane %v3024_v29, 1 }
 0x19b   : > { %4095 = vst [vmem:[#allocation29_spill] sm:$0xff] %v3145_v22  ;;  %1201 = vrot.lane.b32.xlu1 %v3048_v40, %s2614_s20  ;;  %1083 = vrot.lane.b32.xlu0 %v3013_v15, %s2613_s11  ;;  %v733_v22 = vrot.slane %v3010_v53, 7  ;;  %v1388_v53 = vrot.slane %v1360_v63, 2  ;;  %v4028_v27 = vrot.slane %v3058_v59, 1  ;;  %v4031_v51 = vrot.slane %v3032_v32, 1 }
 0x19c   : > { %v3196_v16 = vadd.f32 %v706_v5, %v3071_v2  ;;  %v4032_v63 = vrot.slane %v3075_v36, 1  ;;  %v4096_v37 = vrot.slane %v3127_v0, 2  ;;  %v735_v5 = vrot.slane %v2950_v4, 7 }
 0x19d   : > { %v3220_v6 = vsel %vm839_vm2, %v4029_v3, %v4028_v27  ;;  %v4099_v4 = vrot.slane %v3036_v21, 1  ;;  %v4104_v3 = vrot.slane %v3123_v39, 2 }
 0x19e   : > { %v3206_v45 = vsel %vm1377_vm3, %v4096_v37, %v1384_v50  ;;  %4098 = vst [vmem:[#allocation31_spill] sm:$0xff] %v3220_v6  ;;  %v3227_v37 = vsel %vm839_vm2, %v4031_v51, %v4030_v54  ;;  %v734_v54 = vsel %vm731_vm1, %v732_v7, %v733_v22  ;;  %v3250_v51 = vsel %vm1377_vm3, %v1384_v50, %v1392_v9 }
 0x19f   : > { %1085 = vrot.lane.b32.xlu1 %v3050_v1, %s2613_s11  ;;  %1091 = vrot.lane.b32.xlu0 %v3026_v19, %s2613_s11  ;;  %4097 = vst [vmem:[#allocation30_spill] sm:$0xff] %v3206_v45  ;;  %v3234_v8 = vsel %vm839_vm2, %v4099_v4, %v4032_v63  ;;  %v4102_v45 = vrot.slane %v3040_v24, 1  ;;  %v3246_v6 = vsel %vm1377_vm3, %v4104_v3, %v1386_v61  ;;  %4106 = vst [vmem:[#allocation35_spill] sm:$0xff] %v3250_v51 }
 0x1a0   : > { %4100 = vst [vmem:[#allocation32_spill] sm:$0xff] %v3234_v8  ;;  %4105 = vst [vmem:[#allocation34_spill] sm:$0xff] %v3246_v6  ;;  %v3253_v4 = vsel %vm1377_vm3, %v1386_v61, %v1394_v46  ;;  %v4108_v63 = vrot.slane %v3117_v33, 2  ;;  %v3267_v7 = vsel %vm1377_vm3, %v1382_v23, %v1390_v11  ;;  %v3270_v9 = vsel %vm1377_vm3, %v1388_v53, %v1396_v55 }
 0x1a1   : > { %4107 = vst [vmem:[#allocation36_spill] sm:$0xff] %v3253_v4  ;;  %4112 = vst [vmem:[#allocation39_spill] sm:$0xff] %v3267_v7  ;;  %v3277_v61 = vadd.f32 %v2978_v13, %v3071_v2  ;;  %v748_v50 = vrot.slane %v3135_v44, 7  ;;  %v744_v11 = vrot.slane %v3119_v35, 7  ;;  %v741_v2 = vrot.slane %v2974_v12, 7 }
 0x1a2   : > { %4113 = vst [vmem:[#allocation40_spill] sm:$0xff] %v3270_v9  ;;  %v742_v55 = vrot.slane %v3026_v19, 7  ;;  %v1446_v35 = vrot.slane %v2893_v43, 1  ;;  %v1441_v12 = vrot.slane %v3048_v40, 1  ;;  %v1434_v43 = vrot.slane %v3098_v41, 1 }
 0x1a3   : > { %1093 = vrot.lane.b32.xlu1 %v3060_v42, %s2613_s11  ;;  %1195 = vrot.lane.b32.xlu0 %v3013_v15, %s2614_s20  ;;  %v4101_v15 = vrot.slane %v3083_v26, 1  ;;  %v3258_v26 = vsel %vm1377_vm3, %v4108_v63, %v1382_v23  ;;  %v745_v13 = vsel %vm731_vm1, %v733_v22, %v744_v11  ;;  %v1440_v40 = vrot.slane %v3108_v30, 1  ;;  %v1726_v30 = vld [vmem:[#allocation9 + $0x80] sm:$0xff]  ;;  %v1729_v11 = vld [vmem:[#allocation9 + $0x98] sm:$0xff] }
 0x1a4   : > { %4109 = vst [vmem:[#allocation37_spill] sm:$0xff] %v3258_v26  ;;  %v743_v44 = vsel %vm731_vm1, %v741_v2, %v742_v55  ;;  %v750_v41 = vrot.slane %v3149_v17, 7  ;;  %v1438_v17 = vrot.slane %v3050_v1, 1 }
 0x1a5   : > { %v3241_v27 = vsel %vm839_vm2, %v4102_v45, %v4101_v15  ;;  %v739_v45 = vrot.slane %v3015_v25, 7  ;;  %v4110_v15 = vrot.slane %v3161_v62, 2  ;;  %v737_v25 = vsel %vm731_vm1, %v735_v5, %v736_v58 }
 0x1a6   : > { %4103 = vst [vmem:[#allocation33_spill] sm:$0xff] %v3241_v27  ;;  %v1442_v63 = vsel %vm839_vm2, %v1440_v40, %v1441_v12  ;;  %v751_v5 = vsel %vm731_vm1, %v742_v55, %v750_v41  ;;  %v1443_v55 = vrot.slane %v3151_v47, 1  ;;  %v1760_v40 = vld [vmem:[#allocation9 + $0x190] sm:$0xff]  ;;  %v1714_v41 = vld [vmem:[#allocation9 + $0x20] sm:$0xff] }
 0x1a7   : > { %1197 = vrot.lane.b32.xlu1 %v3050_v1, %s2614_s20  ;;  %1203 = vrot.lane.b32.xlu0 %v3026_v19, %s2614_s20  ;;  %v3264_v3 = vsel %vm1377_vm3, %v4110_v15, %v1388_v53  ;;  %v740_v46 = vsel %vm731_vm1, %v738_v60, %v739_v45  ;;  %v749_v23 = vsel %vm731_vm1, %v739_v45, %v748_v50  ;;  %v1435_v53 = vrot.slane %v3042_v34, 1  ;;  %v1710_v45 = vld [vmem:[#allocation9] sm:$0xff] }
 0x1a8   : > { %4111 = vst [vmem:[#allocation38_spill] sm:$0xff] %v3264_v3  ;;  %v1450_v19 = vrot.slane %v2904_v48, 1  ;;  %v746_v48 = vrot.slane %v3141_v49, 7  ;;  %v1727_v49 = vld [vmem:[#allocation9 + $0x88] sm:$0xff]  ;;  %v1448_v50 = vrot.slane %v2916_v52, 1  ;;  %v1742_v52 = vld [vmem:[#allocation9 + $0x100] sm:$0xff] }
 0x1a9   : > { %v1447_v22 = vsel %vm839_vm2, %v1435_v53, %v1446_v35  ;;  %v1436_v34 = vsel %vm839_vm2, %v1434_v43, %v1435_v53  ;;  %v2256_v15 = vpack.c.bf16 %v1727_v49, %v1726_v30  ;;  %v1759_v53 = vld [vmem:[#allocation9 + $0x188] sm:$0xff]  ;;  %v1712_v35 = vld [vmem:[#allocation9 + $0x10] sm:$0xff] }
 0x1aa   : > { %v747_v60 = vsel %vm731_vm1, %v736_v58, %v746_v48  ;;  %v1437_v58 = vrot.slane %v3110_v31, 1  ;;  %v1444_v31 = vrot.slane %v3060_v42, 1  ;;  %v1449_v43 = vsel %vm839_vm2, %v1438_v17, %v1448_v50  ;;  %v1731_v48 = vld [vmem:[#allocation9 + $0xa8] sm:$0xff] }
 0x1ab   : > { %1205 = vrot.lane.b32.xlu1 %v3060_v42, %s2614_s20  ;;  %760 = vrot.lane.b32.xlu0 %v734_v54, %s2613_s11  ;;  %v1452_v42 = vrot.slane %v2926_v56, 1 }
 0x1ac   : > { %2257 = vmatprep.subr.bf16.mxu0 %v2256_v15  ;;  %v1439_v2 = vsel %vm839_vm2, %v1437_v58, %v1438_v17  ;;  %v1445_v47 = vsel %vm839_vm2, %v1443_v55, %v1444_v31  ;;  %v1744_v15 = vld [vmem:[#allocation9 + $0x110] sm:$0xff]  ;;  %v1762_v17 = vld [vmem:[#allocation9 + $0x1a0] sm:$0xff] }
 0x1ad   : > { %v1453_v30 = vsel %vm839_vm2, %v1444_v31, %v1452_v42  ;;  %v1732_v58 = vld [vmem:[#allocation9 + $0xb0] sm:$0xff]  ;;  %v1746_v31 = vld [vmem:[#allocation9 + $0x120] sm:$0xff] }
 0x1ae   : > { %v1748_v42 = vld [vmem:[#allocation9 + $0x130] sm:$0xff] }
 0x1af   : > { %764 = vrot.lane.b32.xlu1 %v737_v25, %s2613_s11  ;;  %768 = vrot.lane.b32.xlu0 %v740_v46, %s2613_s11 }
 0x1b3   : > { %770 = vrot.lane.b32.xlu1 %v749_v23, %s2613_s11  ;;  %876 = vrot.lane.b32.xlu0 %v734_v54, %s2614_s20  ;;  %v1451_v54 = vsel %vm839_vm2, %v1441_v12, %v1450_v19  ;;  %v1743_v12 = vld [vmem:[#allocation9 + $0x108] sm:$0xff] }
 0x1b7   : > { %878 = vrot.lane.b32.xlu1 %v745_v13, %s2614_s20  ;;  %884 = vrot.lane.b32.xlu0 %v740_v46, %s2614_s20 }
 0x1bb   : > { %886 = vrot.lane.b32.xlu1 %v749_v23, %s2614_s20  ;;  %772 = vrot.lane.b32.xlu0 %v743_v44, %s2613_s11  ;;  %v1728_v23 = vld [vmem:[#allocation9 + $0x90] sm:$0xff] }
 0x1bf   : > { %1464 = vrot.lane.b32.xlu1 %v1447_v22, %s2613_s11  ;;  %880 = vrot.lane.b32.xlu0 %v737_v25, %s2614_s20  ;;  %v1711_v25 = vld [vmem:[#allocation9 + $0x8] sm:$0xff] }
 0x1c0   : > { %v2258_v46 = vpack.c.bf16 %v1711_v25, %v1710_v45  ;;  %v1745_v25 = vld [vmem:[#allocation9 + $0x118] sm:$0xff] }
 0x1c1   : > { %v2294_v56 = vpack.c.bf16 %v1745_v25, %v1744_v15  ;;  %v1750_v25 = vld [vmem:[#allocation9 + $0x140] sm:$0xff] }
 0x1c2   : > { %2259 = vmatpush3.bf16.msra.mxu0 %v2258_v46  ;;  %v1733_v46 = vld [vmem:[#allocation9 + $0xb8] sm:$0xff] }
 0x1c3   : > { %1472 = vrot.lane.b32.xlu1 %v1451_v54, %s2613_s11  ;;  %888 = vrot.lane.b32.xlu0 %v743_v44, %s2614_s20  ;;  %v2260_v44 = vpack.c.bf16 %v1729_v11, %v1728_v23  ;;  %v2268_v50 = vpack.c.bf16 %v1733_v46, %v1732_v58  ;;  %v1763_v23 = vld [vmem:[#allocation9 + $0x1a8] sm:$0xff]  ;;  %v1716_v11 = vld [vmem:[#allocation9 + $0x30] sm:$0xff]  ;;  %v1738_v46 = vld [vmem:[#allocation9 + $0xe0] sm:$0xff] }
 0x1c4   : > { %v2296_v55 = vpack.c.bf16 %v1763_v23, %v1762_v17  ;;  %v1739_v17 = vld [vmem:[#allocation9 + $0xe8] sm:$0xff] }
 0x1c5   : > { %2261 = vmatprep.subr.bf16.mxu0 %v2260_v44  ;;  %v1747_v44 = vld [vmem:[#allocation9 + $0x128] sm:$0xff]  ;;  %v2280_v23 = vpack.c.bf16 %v1739_v17, %v1738_v46  ;;  %v4114_v17 = vlaneseq }
 0x1c7   : > { %1576 = vrot.lane.b32.xlu1 %v1447_v22, %s2614_s20  ;;  %762 = vrot.lane.b32.xlu0 %v745_v13, %s2613_s11  ;;  %v1758_v13 = vld [vmem:[#allocation9 + $0x180] sm:$0xff]  ;;  %v1713_v22 = vld [vmem:[#allocation9 + $0x18] sm:$0xff] }
 0x1c8   : > { %v2288_v1 = vpack.c.bf16 %v1759_v53, %v1758_v13  ;;  %v2262_v19 = vpack.c.bf16 %v1713_v22, %v1712_v35  ;;  %v1717_v13 = vld [vmem:[#allocation9 + $0x38] sm:$0xff]  ;;  %v2298_v53 = vpack.c.bf16 %v1747_v44, %v1746_v31  ;;  %v1734_v35 = vld [vmem:[#allocation9 + $0xc0] sm:$0xff]  ;;  %v1735_v22 = vld [vmem:[#allocation9 + $0xc8] sm:$0xff] }
 0x1c9   : > { %v1752_v44 = vld [vmem:[#allocation9 + $0x150] sm:$0xff] }
 0x1ca   : > { %2289 = vmatprep.subr.bf16.mxu1 %v2288_v1  ;;  %2263 = vmatpush3.bf16.msra.mxu0 %v2262_v19  ;;  %v1764_v1 = vld [vmem:[#allocation9 + $0x1b0] sm:$0xff]  ;;  %v1718_v19 = vld [vmem:[#allocation9 + $0x40] sm:$0xff] }
 0x1cb   : > { %1584 = vrot.lane.b32.xlu1 %v1451_v54, %s2614_s20  ;;  %1462 = vrot.lane.b32.xlu0 %v1436_v34, %s2613_s11  ;;  %v2290_v54 = vpack.c.bf16 %v1743_v12, %v1742_v52  ;;  %v2272_v52 = vpack.c.bf16 %v1735_v22, %v1734_v35  ;;  %v1765_v12 = vld [vmem:[#allocation9 + $0x1b8] sm:$0xff]  ;;  %v1740_v35 = vld [vmem:[#allocation9 + $0xf0] sm:$0xff] }
 0x1cd   : > { %2291 = vmatpush3.bf16.msra.mxu1 %v2290_v54  ;;  %v1719_v54 = vld [vmem:[#allocation9 + $0x48] sm:$0xff] }
 0x1cf   : > { %766 = vrot.lane.b32.xlu1 %v747_v60, %s2613_s11  ;;  %1470 = vrot.lane.b32.xlu0 %v1442_v63, %s2613_s11 }
 0x1d3   : > { %774 = vrot.lane.b32.xlu1 %v751_v5, %s2613_s11  ;;  %1574 = vrot.lane.b32.xlu0 %v1436_v34, %s2614_s20  ;;  %v1730_v34 = vld [vmem:[#allocation9 + $0xa0] sm:$0xff] }
 0x1d7   : > { %882 = vrot.lane.b32.xlu1 %v747_v60, %s2614_s20  ;;  %1582 = vrot.lane.b32.xlu0 %v1442_v63, %s2614_s20  ;;  %v2264_v60 = vpack.c.bf16 %v1731_v48, %v1730_v34  ;;  %v1761_v63 = vld [vmem:[#allocation9 + $0x198] sm:$0xff] }
 0x1d8   : > { %v2292_v49 = vpack.c.bf16 %v1761_v63, %v1760_v40  ;;  %v1749_v34 = vld [vmem:[#allocation9 + $0x138] sm:$0xff]  ;;  %v1736_v40 = vld [vmem:[#allocation9 + $0xd0] sm:$0xff]  ;;  %v1766_v63 = vld [vmem:[#allocation9 + $0x1c0] sm:$0xff] }
 0x1d9   : > { %2265 = vmatprep.subr.bf16.mxu0 %v2264_v60  ;;  %v2302_v48 = vpack.c.bf16 %v1749_v34, %v1748_v42  ;;  %v1737_v60 = vld [vmem:[#allocation9 + $0xd8] sm:$0xff]  ;;  %v1754_v42 = vld [vmem:[#allocation9 + $0x160] sm:$0xff] }
 0x1da   : > { %2293 = vmatprep.subr.bf16.mxu1 %v2292_v49  ;;  %v1721_v49 = vld [vmem:[#allocation9 + $0x58] sm:$0xff] }
 0x1db   : > { %890 = vrot.lane.b32.xlu1 %v751_v5, %s2614_s20  ;;  %1466 = vrot.lane.b32.xlu0 %v1439_v2, %s2613_s11  ;;  %v1715_v5 = vld [vmem:[#allocation9 + $0x28] sm:$0xff] }
 0x1dc   : > { %v2266_v45 = vpack.c.bf16 %v1715_v5, %v1714_v41  ;;  %2295 = vmatpush3.bf16.msra.mxu1 %v2294_v56  ;;  %v2276_v41 = vpack.c.bf16 %v1737_v60, %v1736_v40  ;;  %v1767_v5 = vld [vmem:[#allocation9 + $0x1c8] sm:$0xff]  ;;  %v1772_v40 = vld [vmem:[#allocation9 + $0x1f0] sm:$0xff]  ;;  %v1773_v60 = vld [vmem:[#allocation9 + $0x1f8] sm:$0xff] }
 0x1dd   : > { %2297 = vmatprep.subr.bf16.mxu1 %v2296_v55  ;;  %v1751_v56 = vld [vmem:[#allocation9 + $0x148] sm:$0xff] }
 0x1de   : > { %2267 = vmatpush3.bf16.msra.mxu0 %v2266_v45  ;;  %v2304_v45 = vpack.c.bf16 %v1767_v5, %v1766_v63  ;;  %v2306_v58 = vpack.c.bf16 %v1751_v56, %v1750_v25  ;;  %v1723_v55 = vld [vmem:[#allocation9 + $0x68] sm:$0xff]  ;;  %v1756_v5 = vld [vmem:[#allocation9 + $0x170] sm:$0xff]  ;;  %v3344_v56 = vsub.s32 4, %v2884_v38 }
 0x1df   : > { %1468 = vrot.lane.b32.xlu1 %v1449_v43, %s2613_s11  ;;  %1474 = vrot.lane.b32.xlu0 %v1445_v47, %s2613_s11 }
 0x1e0   : > { %2269 = vmatprep.subr.bf16.mxu0 %v2268_v50  ;;  %2299 = vmatpush3.bf16.msra.mxu1 %v2298_v53  ;;  %v1768_v50 = vld [vmem:[#allocation9 + $0x1d0] sm:$0xff]  ;;  %v1753_v53 = vld [vmem:[#allocation9 + $0x158] sm:$0xff] }
 0x1e1   : > { %v2310_v22 = vpack.c.bf16 %v1753_v53, %v1752_v44  ;;  %v3363_v44 = vsub.s32 6, %v2884_v38 }
 0x1e3   : > { %1476 = vrot.lane.b32.xlu1 %v1453_v30, %s2613_s11  ;;  %1578 = vrot.lane.b32.xlu0 %v1439_v2, %s2614_s20  ;;  %v2270_v2 = vpack.c.bf16 %v1717_v13, %v1716_v11  ;;  %v1769_v11 = vld [vmem:[#allocation9 + $0x1d8] sm:$0xff]  ;;  %v1722_v13 = vld [vmem:[#allocation9 + $0x60] sm:$0xff]  ;;  %s2532_s11 = scalar_lea.vmem %s2531_s1, 512 }
 0x1e4   : > { %v2282_v31 = vpack.c.bf16 %v1723_v55, %v1722_v13  ;;  %p2534_p2 = scmp.lt.s32.totalorder %s2532_s11, %s2526_s22 }
 0x1e5   : > { %2271 = vmatpush3.bf16.msra.mxu0 %v2270_v2  ;;  %v2308_v2 = vpack.c.bf16 %v1769_v11, %v1768_v50  ;;  %v3349_v50 = vand.u32 127, %v4114_v17  ;;  %v1114_v11 = vrot.slane %v2993_v20, %v2981_v14 }
 0x1e6   : > { %2273 = vmatprep.subr.bf16.mxu0 %v2272_v52  ;;  %v1770_v52 = vld [vmem:[#allocation9 + $0x1e0] sm:$0xff]  ;;  %p2535_p1 = por %p2534_p2, %p2533_p12 }
 0x1e7   : > { %1580 = vrot.lane.b32.xlu1 %v1449_v43, %s2614_s20  ;;  %1586 = vrot.lane.b32.xlu0 %v1445_v47, %s2614_s20  ;;  %v2300_v43 = vpack.c.bf16 %v1765_v12, %v1764_v1  ;;  %v2274_v47 = vpack.c.bf16 %v1719_v54, %v1718_v19  ;;  %v1741_v1 = vld [vmem:[#allocation9 + $0xf8] sm:$0xff]  ;;  %v1771_v12 = vld [vmem:[#allocation9 + $0x1e8] sm:$0xff]  ;;  %vm778_vm4 = vcmp.lt.s32.totalorder %v3349_v50, 32  ;;  %vm892_vm5 = vcmp.lt.s32.totalorder %v3349_v50, 96 }
 0x1e8   : > { %v2284_v19 = vpack.c.bf16 %v1741_v1, %v1740_v35  ;;  %v2312_v54 = vpack.c.bf16 %v1771_v12, %v1770_v52  ;;  %v1118_v1 = vrot.slane %v2993_v20, %v3344_v56  ;;  %p2536_p4 = pnand %p2535_p1, %p2529_p7 }
 0x1e9   : > { %2301 = vmatprep.subr.bf16.mxu1 %v2300_v43  ;;  %2275 = vmatpush3.bf16.msra.mxu0 %v2274_v47  ;;  %v1724_v43 = vld [vmem:[#allocation9 + $0x70] sm:$0xff]  ;;  %v1725_v47 = vld [vmem:[#allocation9 + $0x78] sm:$0xff] }
 0x1ea   : > { %2303 = vmatpush3.bf16.msra.mxu1 %v2302_v48  ;;  %2277 = vmatprep.subr.bf16.mxu0 %v2276_v41  ;;  %v2286_v34 = vpack.c.bf16 %v1725_v47, %v1724_v43  ;;  %v1755_v48 = vld [vmem:[#allocation9 + $0x168] sm:$0xff]  ;;  %v2316_v41 = vpack.c.bf16 %v1773_v60, %v1772_v40  ;;  %v1222_v47 = vrot.slane %v2990_v18, %v3363_v44 }
 0x1eb   : > { %1588 = vrot.lane.b32.xlu1 %v1453_v30, %s2614_s20  ;;  %v1720_v30 = vld [vmem:[#allocation9 + $0x50] sm:$0xff]  ;;  %2305 = vmatprep.subr.bf16.mxu1 %v2304_v45  ;;  %v2314_v63 = vpack.c.bf16 %v1755_v48, %v1754_v42  ;;  %v1138_v48 = vrot.slane %v1118_v1, %v2981_v14 }
 0x1ec   : > { %v2278_v15 = vpack.c.bf16 %v1721_v49, %v1720_v30  ;;  %v1757_v30 = vld [vmem:[#allocation9 + $0x178] sm:$0xff] }
 0x1ed   : > { %v2318_v45 = vpack.c.bf16 %v1757_v30, %v1756_v5 }
 0x1ee   : > { %2279 = vmatpush3.bf16.msra.mxu0 %v2278_v15  ;;  %2307 = vmatpush3.bf16.msra.mxu1 %v2306_v58 }
 0x1ef   : > { %2281 = vmatprep.subr.bf16.mxu0 %v2280_v23  ;;  %2309 = vmatprep.subr.bf16.mxu1 %v2308_v2  ;;  %v1110_v23 = vrot.slane %v2990_v18, %v3344_v56 }
 0x1f1   : > { %v1130_v2 = vrot.slane %v1110_v23, %v2981_v14 }
 0x1f2   : > { %2283 = vmatpush3.bf16.msra.mxu0 %v2282_v31  ;;  %2311 = vmatpush3.bf16.msra.mxu1 %v2310_v22  ;;  %v1134_v31 = vrot.slane %v1114_v11, %v2981_v14  ;;  %v1106_v22 = vrot.slane %v2990_v18, %v2981_v14 }
 0x1f3   : > { %2285 = vmatprep.subr.bf16.mxu0 %v2284_v19  ;;  %2313 = vmatprep.subr.bf16.mxu1 %v2312_v54  ;;  %v4115_v19 = vld [vmem:[#allocation20_spill] sm:$0xff] }
 0x1f4   : > { %v1218_v54 = vrot.slane %v2990_v18, %v4115_v19  ;;  %v1226_v17 = vrot.slane %v2993_v20, %v4115_v19 }
 0x1f6   : > { %2287 = vmatpush3.bf16.msra.mxu0 %v2286_v34  ;;  %2315 = vmatpush3.bf16.msra.mxu1 %v2314_v63  ;;  %v1126_v34 = vrot.slane %v1106_v22, %v2981_v14 }
 0x1f7   : > { %2317 = vmatprep.subr.bf16.mxu1 %v2316_v41 }
 0x1fa   : > { %2319 = vmatpush3.bf16.msra.mxu1 %v2318_v45  ;;  %v1238_v45 = vrot.slane %v1218_v54, %v4115_v19 }
 0x1fd   : > { %v1080_v49 = vpop.permute.xlu0 %1079 }
 0x201   : > { %v1082_v15 = vpop.permute.xlu1 %1081  ;;  %v1088_v25 = vpop.permute.xlu0 %1087 }
 0x205   : > { %v1090_v58 = vpop.permute.xlu1 %1089  ;;  %v3346_v46 = vpop.permute.xlu0 %1191 }
 0x209   : > { %v3355_v13 = vpop.permute.xlu1 %1193  ;;  %v3357_v55 = vpop.permute.xlu0 %1199 }
 0x20d   : > { %v3365_v53 = vpop.permute.xlu1 %1201  ;;  %v1084_v35 = vpop.permute.xlu0 %1083 }
 0x20e   : > { %v1097_v52 = vsel %vm778_vm4, %v1084_v35, %v1088_v25  ;;  %v1099_v12 = vsel %vm778_vm4, %v1080_v49, %v1084_v35  ;;  %v1242_v35 = vrot.slane %v1222_v47, %v4115_v19 }
 0x20f   : > { %v3377_v38 = vmul.f32 %v1130_v2, %v1099_v12  ;;  %v3379_v43 = vmul.f32 %v1134_v31, %v1097_v52 }
 0x211   : > { %v1086_v42 = vpop.permute.xlu1 %1085  ;;  %v1092_v40 = vpop.permute.xlu0 %1091  ;;  %v4037_v23 = vrot.slane %v3377_v38, 1  ;;  %v4036_v11 = vrot.slane %v3379_v43, 1 }
 0x212   : > { %v1098_v60 = vsel %vm778_vm4, %v1086_v42, %v1090_v58  ;;  %v1100_v63 = vsel %vm778_vm4, %v1082_v15, %v1086_v42  ;;  %v1095_v41 = vsel %vm778_vm4, %v1088_v25, %v1092_v40  ;;  %v1101_v18 = vsel %vm778_vm4, %v1092_v40, %v1080_v49 }
 0x213   : > { %v3394_v5 = vmul.f32 %v1130_v2, %v1100_v63  ;;  %v3396_v30 = vmul.f32 %v1134_v31, %v1098_v60  ;;  %v1230_v25 = vrot.slane %v2993_v20, %v3363_v44  ;;  %v3408_v31 = vmul.f32 %v1126_v34, %v1101_v18 }
 0x214   : > { %v3410_v22 = vmul.f32 %v1138_v48, %v1095_v41  ;;  %v1246_v41 = vrot.slane %v1226_v17, %v4115_v19 }
 0x215   : > { %4116 = vst [vmem:[#allocation20_spill] sm:$0xff] %v3394_v5  ;;  %4117 = vst [vmem:[#allocation41_spill] sm:$0xff] %v3396_v30  ;;  %v4034_v49 = vrot.slane %v3394_v5, 1  ;;  %v4035_v2 = vrot.slane %v3396_v30, 1  ;;  %v1094_v1 = vpop.permute.xlu1 %1093  ;;  %v1196_v52 = vpop.permute.xlu0 %1195  ;;  %v1250_v18 = vrot.slane %v1230_v25, %v4115_v19  ;;  %v4122_v25 = vld [vmem:[#allocation16_spill] sm:$0xff]  ;;  %v4138_v30 = vld [vmem:[#allocation18_spill] sm:$0xff] }
 0x216   : > { %v1096_v12 = vsel %vm778_vm4, %v1090_v58, %v1094_v1  ;;  %v1102_v54 = vsel %vm778_vm4, %v1094_v1, %v1082_v15  ;;  %v1209_v20 = vsel %vm892_vm5, %v1196_v52, %v3357_v55  ;;  %v1211_v47 = vsel %vm892_vm5, %v3346_v46, %v1196_v52 }
 0x217   : > { %v3427_v42 = vsel %vm839_vm2, %v4037_v23, %v4034_v49  ;;  %v3434_v15 = vsel %vm839_vm2, %v4036_v11, %v4035_v2  ;;  %v3436_v58 = vmul.f32 %v1126_v34, %v1102_v54  ;;  %v3438_v40 = vmul.f32 %v1138_v48, %v1096_v12 }
 0x218   : > { %4118 = vst [vmem:[#allocation42_spill] sm:$0xff] %v3427_v42  ;;  %4119 = vst [vmem:[#allocation43_spill] sm:$0xff] %v3434_v15  ;;  %v3440_v60 = vmul.f32 %v1238_v45, %v1211_v47  ;;  %v3442_v63 = vmul.f32 %v1242_v35, %v1209_v20  ;;  %v4039_v1 = vrot.slane %v3408_v31, 1  ;;  %v4041_v52 = vrot.slane %v3410_v22, 1  ;;  %v4123_v20 = vld [vmem:[#allocation17_spill] sm:$0xff] }
 0x219   : > { %4120 = vst [vmem:[#allocation44_spill] sm:$0xff] %v3436_v58  ;;  %4121 = vst [vmem:[#allocation45_spill] sm:$0xff] %v3438_v40  ;;  %v4038_v49 = vrot.slane %v3436_v58, 1  ;;  %v4040_v2 = vrot.slane %v3438_v40, 1  ;;  %v1198_v34 = vpop.permute.xlu1 %1197  ;;  %v1204_v54 = vpop.permute.xlu0 %1203  ;;  %v794_v12 = vrot.slane %v4122_v25, %v3344_v56  ;;  %v798_v47 = vrot.slane %v4123_v20, %v2981_v14 }
 0x21a   : > { %v1210_v48 = vsel %vm892_vm5, %v1198_v34, %v3365_v53  ;;  %v1212_v17 = vsel %vm892_vm5, %v3355_v13, %v1198_v34  ;;  %v4043_v3 = vrot.slane %v3440_v60, 1  ;;  %v4046_v26 = vrot.slane %v3442_v63, 1 }
 0x21b   : > { %v3465_v11 = vsel %vm839_vm2, %v4039_v1, %v4038_v49  ;;  %v3472_v23 = vsel %vm839_vm2, %v4041_v52, %v4040_v2  ;;  %v3474_v34 = vmul.f32 %v1238_v45, %v1212_v17  ;;  %v3476_v7 = vmul.f32 %v1242_v35, %v1210_v48 }
 0x21c   : > { %4124 = vst [vmem:[#allocation16_spill] sm:$0xff] %v3465_v11  ;;  %4125 = vst [vmem:[#allocation17_spill] sm:$0xff] %v3472_v23  ;;  %v1207_v49 = vsel %vm892_vm5, %v3357_v55, %v1204_v54  ;;  %v1213_v1 = vsel %vm892_vm5, %v1204_v54, %v3346_v46  ;;  %v916_v51 = vrot.slane %v4123_v20, %v3363_v44 }
 0x21d   : > { %4126 = vst [vmem:[#allocation46_spill] sm:$0xff] %v3474_v34  ;;  %4127 = vst [vmem:[#allocation47_spill] sm:$0xff] %v3476_v7  ;;  %v4042_v9 = vrot.slane %v3474_v34, 1  ;;  %v4045_v2 = vrot.slane %v3476_v7, 1  ;;  %v3488_v45 = vmul.f32 %v1246_v41, %v1207_v49  ;;  %v3490_v35 = vmul.f32 %v1250_v18, %v1213_v1  ;;  %v1206_v48 = vpop.permute.xlu1 %1205  ;;  %v761_v17 = vpop.permute.xlu0 %760 }
 0x21e   : > { %v1208_v52 = vsel %vm892_vm5, %v3365_v53, %v1206_v48  ;;  %v1214_v55 = vsel %vm892_vm5, %v1206_v48, %v3355_v13  ;;  %v3513_v53 = vrot.slane %v794_v12, %v2981_v14  ;;  %v3516_v1 = vrot.slane %v798_v47, %v2981_v14  ;;  %v4132_v48 = vld [vmem:[#allocation21_spill] sm:$0xff]  ;;  %v4133_v47 = vld [vmem:[#allocation19_spill] sm:$0xff] }
 0x21f   : > { %v3503_v46 = vsel %vm839_vm2, %v4043_v3, %v4042_v9  ;;  %v3510_v49 = vsel %vm839_vm2, %v4046_v26, %v4045_v2  ;;  %v3518_v13 = vmul.f32 %v1246_v41, %v1208_v52  ;;  %v3520_v54 = vmul.f32 %v1250_v18, %v1214_v55 }
 0x220   : > { %4128 = vst [vmem:[#allocation48_spill] sm:$0xff] %v3503_v46  ;;  %4129 = vst [vmem:[#allocation49_spill] sm:$0xff] %v3510_v49  ;;  %v3524_v9 = vrot.slane %v4132_v48, %v4115_v19  ;;  %v4050_v3 = vrot.slane %v3488_v45, 1 }
 0x221   : > { %4130 = vst [vmem:[#allocation50_spill] sm:$0xff] %v3518_v13  ;;  %4131 = vst [vmem:[#allocation51_spill] sm:$0xff] %v3520_v54  ;;  %v765_v2 = vpop.permute.xlu1 %764  ;;  %v769_v26 = vpop.permute.xlu0 %768  ;;  %v4049_v12 = vrot.slane %v3518_v13, 1  ;;  %v4135_v4 = vrot.slane %v3520_v54, 1  ;;  %v3573_v54 = vrot.slane %v4132_v48, %v2981_v14 }
 0x222   : > { %v783_v41 = vsel %vm778_vm4, %v761_v17, %v765_v2  ;;  %v781_v18 = vsel %vm778_vm4, %v765_v2, %v769_v26  ;;  %v709_v55 = vadd.f32 %v4133_v47, %v3524_v9  ;;  %v4136_v2 = vrot.slane %v3490_v35, 1 }
 0x223   : > { %v3535_v52 = vmul.f32 %v3513_v53, %v783_v41  ;;  %v3540_v34 = vmul.f32 %v3516_v1, %v781_v18  ;;  %v3547_v6 = vsel %vm839_vm2, %v4050_v3, %v4049_v12  ;;  %v790_v3 = vrot.slane %v4122_v25, %v2981_v14 }
 0x224   : > { %4134 = vst [vmem:[#allocation21_spill] sm:$0xff] %v3547_v6  ;;  %v3554_v41 = vsel %vm839_vm2, %v4136_v2, %v4135_v4  ;;  %v802_v4 = vrot.slane %v4123_v20, %v3344_v56  ;;  %v707_v23 = vadd.f32 %v4138_v30, %v3573_v54 }
 0x225   : > { %4137 = vst [vmem:[#allocation19_spill] sm:$0xff] %v3554_v41  ;;  %v4053_v46 = vrot.slane %v3535_v52, 1  ;;  %v4052_v47 = vrot.slane %v3540_v34, 1  ;;  %v3558_v18 = vpop.permute.xlu1 %770  ;;  %v877_v40 = vpop.permute.xlu0 %876  ;;  %v3576_v6 = vrot.slane %v790_v3, %v2981_v14 }
 0x227   : > { %v865_v13 = vadd.f32 %v4053_v46, %v3190_v28  ;;  %v866_v12 = vadd.f32 %v4052_v47, %v709_v55  ;;  %v3579_v28 = vrot.slane %v802_v4, %v2981_v14  ;;  %v904_v55 = vrot.slane %v4122_v25, %v4115_v19 }
 0x228   : > { %v908_v47 = vrot.slane %v4122_v25, %v3363_v44  ;;  %v912_v4 = vrot.slane %v4123_v20, %v4115_v19 }
 0x229   : > { %v3569_v2 = vpop.permute.xlu1 %878  ;;  %v885_v41 = vpop.permute.xlu0 %884  ;;  %v3604_v30 = vrot.slane %v904_v55, %v4115_v19  ;;  %v3621_v55 = vrot.slane %v916_v51, %v4115_v19 }
 0x22d   : > { %v3585_v46 = vpop.permute.xlu1 %886  ;;  %v773_v15 = vpop.permute.xlu0 %772 }
 0x22e   : > { %v779_v48 = vsel %vm778_vm4, %v769_v26, %v773_v15  ;;  %v785_v3 = vsel %vm778_vm4, %v773_v15, %v761_v17  ;;  %v3607_v26 = vrot.slane %v908_v47, %v4115_v19 }
 0x22f   : > { %v3598_v25 = vmul.f32 %v3576_v6, %v785_v3  ;;  %v3601_v36 = vmul.f32 %v3579_v28, %v779_v48  ;;  %v3618_v3 = vrot.slane %v912_v4, %v4115_v19 }
 0x231   : > { %v4058_v15 = vrot.slane %v3598_v25, 1  ;;  %v4059_v17 = vrot.slane %v3601_v36, 1  ;;  %v3611_v27 = vpop.permute.xlu1 %1464  ;;  %v881_v8 = vpop.permute.xlu0 %880 }
 0x232   : > { %4139 = vst [vmem:[#allocation18_spill] sm:$0xff] %v3611_v27  ;;  %v895_v20 = vsel %vm892_vm5, %v881_v8, %v885_v41  ;;  %v897_v48 = vsel %vm892_vm5, %v877_v40, %v881_v8 }
 0x233   : > { %v864_v47 = vadd.f32 %v4058_v15, %v707_v23  ;;  %v867_v27 = vadd.f32 %v4059_v17, %v3277_v61  ;;  %v3629_v7 = vmul.f32 %v3604_v30, %v897_v48  ;;  %v3632_v49 = vmul.f32 %v3607_v26, %v895_v20 }
 0x235   : > { %v4062_v8 = vrot.slane %v3629_v7, 1  ;;  %v4063_v4 = vrot.slane %v3632_v49, 1  ;;  %v3636_v42 = vpop.permute.xlu1 %1472  ;;  %v889_v51 = vpop.permute.xlu0 %888 }
 0x236   : > { %4140 = vst [vmem:[#allocation52_spill] sm:$0xff] %v3636_v42  ;;  %v893_v23 = vsel %vm892_vm5, %v885_v41, %v889_v51  ;;  %v899_v15 = vsel %vm892_vm5, %v889_v51, %v877_v40  ;;  %v4141_v42 = vrot.slane %v3024_v29, 1  ;;  %v4142_v41 = vrot.slane %v3032_v32, 1 }
 0x237   : > { %v977_v61 = vadd.f32 %v4062_v8, %v864_v47  ;;  %v978_v20 = vadd.f32 %v4063_v4, %v865_v13  ;;  %v3647_v48 = vmul.f32 %v3618_v3, %v893_v23  ;;  %v3650_v17 = vmul.f32 %v3621_v55, %v899_v15 }
 0x238   : > { %v4144_v13 = vrot.slane %v3408_v31, 1  ;;  %v4145_v4 = vrot.slane %v3377_v38, 1 }
 0x239   : > { %v1067_v11 = vadd.f32 %v4141_v42, %v977_v61  ;;  %v1068_v5 = vadd.f32 %v4142_v41, %v978_v20  ;;  %v955_v40 = vrot.slane %v3647_v48, 1  ;;  %v956_v51 = vrot.slane %v3650_v17, 1  ;;  %v3658_v47 = vpop.permute.xlu1 %1576  ;;  %v763_v8 = vpop.permute.xlu0 %762  ;;  %v4180_v48 = vld [vmem:[#allocation47_spill] sm:$0xff]  ;;  %v4182_v17 = vld [vmem:[#allocation32_spill] sm:$0xff] }
 0x23a   : > { %4143 = vst [vmem:[#allocation53_spill] sm:$0xff] %v3658_v47  ;;  %v4146_v42 = vrot.slane %v3036_v21, 1  ;;  %v4147_v20 = vrot.slane %v3040_v24, 1 }
 0x23b   : > { %v1179_v23 = vadd.f32 %v4144_v13, %v1067_v11  ;;  %v1180_v15 = vadd.f32 %v4145_v4, %v1068_v5  ;;  %v979_v29 = vadd.f32 %v955_v40, %v866_v12  ;;  %v980_v32 = vadd.f32 %v956_v51, %v867_v27 }
 0x23c   : > { %v4148_v11 = vrot.slane %v3442_v63, 1  ;;  %v4149_v5 = vrot.slane %v3440_v60, 1  ;;  %v4150_v12 = vrot.slane %v3379_v43, 1  ;;  %v4151_v27 = vrot.slane %v3410_v22, 1  ;;  %v4154_v43 = vld [vmem:[#allocation22_spill] sm:$0xff] }
 0x23d   : > { %v1069_v61 = vadd.f32 %v4146_v42, %v979_v29  ;;  %v1070_v41 = vadd.f32 %v4147_v20, %v980_v32  ;;  %v3672_v47 = vpop.permute.xlu1 %1584  ;;  %v3674_v58 = vpop.permute.xlu0 %1462  ;;  %v4152_v13 = vrot.slane %v3127_v0, 2  ;;  %v4153_v29 = vrot.slane %v3117_v33, 2  ;;  %v2408_v42 = vld [vmem:[#allocation8 + $0x20] sm:$0x77] }
 0x23e   : > { %v1292_v38 = vadd.f32 %v4148_v11, %v1180_v15  ;;  %v1291_v31 = vadd.f32 %v4149_v5, %v1179_v23  ;;  %v1493_v63 = vrot.slane %v2408_v42, %v3344_v56  ;;  %v2409_v15 = vld [vmem:[#allocation8 + $0x28] sm:$0x77]  ;;  %v711_v23 = vadd.f32 %v4154_v43, %v3573_v54  ;;  %v4155_v22 = vld [vmem:[#allocation26_spill] sm:$0xff]  ;;  %v4158_v5 = vld [vmem:[#allocation29_spill] sm:$0xff] }
 0x23f   : > { %v1181_v4 = vadd.f32 %v4150_v12, %v1069_v61  ;;  %v1182_v21 = vadd.f32 %v4151_v27, %v1070_v41  ;;  %v1497_v60 = vrot.slane %v2409_v15, %v2981_v14  ;;  %v713_v61 = vadd.f32 %v4155_v22, %v3524_v9 }
 0x240   : > { %v3686_v24 = vadd.f32 %v4152_v13, %v1292_v38  ;;  %v3690_v32 = vadd.f32 %v4153_v29, %v1291_v31  ;;  %v4156_v41 = vrot.slane %v3488_v45, 1  ;;  %v4157_v11 = vrot.slane %v3490_v35, 1  ;;  %v4159_v13 = vld [vmem:[#allocation28_spill] sm:$0xff] }
 0x241   : > { %v767_v20 = vpop.permute.xlu1 %766  ;;  %v3698_v0 = vpop.permute.xlu0 %1470  ;;  %v717_v31 = vadd.f32 %v4158_v5, %v3524_v9  ;;  %v715_v29 = vadd.f32 %v4159_v13, %v3573_v54  ;;  %v4160_v35 = vrot.slane %v3123_v39, 2  ;;  %v4161_v9 = vrot.slane %v3161_v62, 2 }
 0x242   : > { %v1293_v33 = vadd.f32 %v4156_v41, %v1181_v4  ;;  %v1294_v38 = vadd.f32 %v4157_v11, %v1182_v21  ;;  %v782_v12 = vsel %vm778_vm4, %v767_v20, %v3558_v18  ;;  %v784_v27 = vsel %vm778_vm4, %v763_v8, %v767_v20 }
 0x243   : > { %v828_v43 = vmul.f32 %v3513_v53, %v784_v27  ;;  %v829_v45 = vmul.f32 %v3516_v1, %v782_v12  ;;  %v3724_v22 = vrot.slane %v1493_v63, %v2981_v14  ;;  %v3727_v20 = vrot.slane %v1497_v60, %v2981_v14 }
 0x244   : > { %v3717_v4 = vadd.f32 %v4160_v35, %v1293_v33  ;;  %v3721_v21 = vadd.f32 %v4161_v9, %v1294_v38  ;;  %v1489_v54 = vrot.slane %v2408_v42, %v2981_v14  ;;  %v1501_v53 = vrot.slane %v2409_v15, %v3344_v56 }
 0x245   : > { %v846_v41 = vrot.slane %v828_v43, 1  ;;  %v848_v1 = vrot.slane %v829_v45, 1  ;;  %v775_v11 = vpop.permute.xlu1 %774  ;;  %v3731_v39 = vpop.permute.xlu0 %1574  ;;  %v1601_v33 = vrot.slane %v2408_v42, %v4115_v19  ;;  %v1605_v62 = vrot.slane %v2408_v42, %v3363_v44  ;;  %v4164_v45 = vld [vmem:[#allocation25_spill] sm:$0xff] }
 0x246   : > { %v780_v63 = vsel %vm778_vm4, %v3558_v18, %v775_v11  ;;  %v786_v60 = vsel %vm778_vm4, %v775_v11, %v763_v8  ;;  %v1609_v38 = vrot.slane %v2409_v15, %v4115_v19  ;;  %v1613_v56 = vrot.slane %v2409_v15, %v3363_v44 }
 0x247   : > { %v4162_v5 = vrot.slane %v3535_v52, 1  ;;  %v4163_v27 = vrot.slane %v3540_v34, 1  ;;  %v873_v42 = vadd.f32 %v846_v41, %v3186_v57  ;;  %v874_v43 = vadd.f32 %v848_v1, %v717_v31 }
 0x248   : > { %v827_v8 = vmul.f32 %v3576_v6, %v786_v60  ;;  %v830_v9 = vmul.f32 %v3579_v28, %v780_v63  ;;  %v3755_v52 = vrot.slane %v1489_v54, %v2981_v14  ;;  %v3758_v34 = vrot.slane %v1501_v53, %v2981_v14 }
 0x249   : > { %v847_v12 = vsel %vm839_vm2, %v4162_v5, %v846_v41  ;;  %v849_v13 = vsel %vm839_vm2, %v4163_v27, %v848_v1  ;;  %v883_v11 = vpop.permute.xlu1 %882  ;;  %v3752_v44 = vpop.permute.xlu0 %1582  ;;  %v3761_v15 = vrot.slane %v1601_v33, %v4115_v19  ;;  %v3764_v57 = vrot.slane %v1605_v62, %v4115_v19 }
 0x24a   : > { %v869_v18 = vadd.f32 %v847_v12, %v4164_v45  ;;  %v870_v35 = vadd.f32 %v849_v13, %v713_v61  ;;  %v844_v61 = vrot.slane %v827_v8, 1  ;;  %v850_v31 = vrot.slane %v830_v9, 1  ;;  %v4167_v12 = vld [vmem:[#allocation27_spill] sm:$0xff] }
 0x24b   : > { %v896_v6 = vsel %vm892_vm5, %v883_v11, %v3585_v46  ;;  %v898_v28 = vsel %vm892_vm5, %v3569_v2, %v883_v11  ;;  %v3775_v53 = vrot.slane %v1609_v38, %v4115_v19  ;;  %v3778_v41 = vrot.slane %v1613_v56, %v4115_v19 }
 0x24c   : > { %v941_v54 = vmul.f32 %v3604_v30, %v898_v28  ;;  %v942_v14 = vmul.f32 %v3607_v26, %v896_v6  ;;  %v4165_v1 = vrot.slane %v3598_v25, 1  ;;  %v4166_v62 = vrot.slane %v3601_v36, 1 }
 0x24d   : > { %v872_v60 = vadd.f32 %v844_v61, %v715_v29  ;;  %v875_v5 = vadd.f32 %v850_v31, %v3196_v16  ;;  %v891_v13 = vpop.permute.xlu1 %890  ;;  %v1467_v45 = vpop.permute.xlu0 %1466  ;;  %v4169_v56 = vrot.slane %v3632_v49, 1  ;;  %v4170_v6 = vrot.slane %v3058_v59, 1 }
 0x24e   : > { %v845_v33 = vsel %vm839_vm2, %v4165_v1, %v844_v61  ;;  %v851_v63 = vsel %vm839_vm2, %v4166_v62, %v850_v31  ;;  %v957_v27 = vrot.slane %v941_v54, 1  ;;  %v959_v38 = vrot.slane %v942_v14, 1  ;;  %v4172_v1 = vld [vmem:[#allocation31_spill] sm:$0xff] }
 0x24f   : > { %v868_v30 = vadd.f32 %v845_v33, %v711_v23  ;;  %v871_v26 = vadd.f32 %v851_v63, %v4167_v12  ;;  %v894_v19 = vsel %vm892_vm5, %v3585_v46, %v891_v13  ;;  %v900_v36 = vsel %vm892_vm5, %v891_v13, %v3569_v2  ;;  %v4173_v63 = vld [vmem:[#allocation44_spill] sm:$0xff]  ;;  %v4178_v13 = vld [vmem:[#allocation42_spill] sm:$0xff] }
 0x250   : > { %v1480_v25 = vsel %vm778_vm4, %v1467_v45, %v3698_v0  ;;  %v1482_v16 = vsel %vm778_vm4, %v3674_v58, %v1467_v45  ;;  %v4168_v23 = vrot.slane %v3629_v7, 1  ;;  %v960_v46 = vsel %vm839_vm2, %v4169_v56, %v959_v38 }
 0x251   : > { %v985_v8 = vadd.f32 %v957_v27, %v872_v60  ;;  %v986_v9 = vadd.f32 %v959_v38, %v873_v42  ;;  %v982_v2 = vadd.f32 %v960_v46, %v869_v18  ;;  %v943_v61 = vmul.f32 %v3618_v3, %v894_v19 }
 0x252   : > { %v958_v29 = vsel %vm839_vm2, %v4168_v23, %v957_v27  ;;  %v944_v31 = vmul.f32 %v3621_v55, %v900_v36  ;;  %v4171_v54 = vrot.slane %v3079_v10, 1  ;;  %v1523_v14 = vmul.f32 %v3724_v22, %v1482_v16  ;;  %v4175_v55 = vld [vmem:[#allocation20_spill] sm:$0xff]  ;;  %v1469_v36 = vpop.permute.xlu1 %1468 }
 0x253   : > { %v981_v11 = vadd.f32 %v958_v29, %v868_v30  ;;  %v1075_v28 = vadd.f32 %v4170_v6, %v985_v8  ;;  %v1524_v49 = vmul.f32 %v3727_v20, %v1480_v25  ;;  %v1072_v42 = vadd.f32 %v3227_v37, %v982_v2  ;;  %v4177_v10 = vld [vmem:[#allocation16_spill] sm:$0xff]  ;;  %v4179_v8 = vld [vmem:[#allocation49_spill] sm:$0xff]  ;;  %v1475_v2 = vpop.permute.xlu0 %1474 }
 0x254   : > { %v1076_v7 = vadd.f32 %v4171_v54, %v986_v9  ;;  %v961_v62 = vrot.slane %v943_v61, 1  ;;  %v963_v18 = vrot.slane %v944_v31, 1  ;;  %v4174_v3 = vrot.slane %v4173_v63, 1 }
 0x255   : > { %v1071_v33 = vadd.f32 %v4172_v1, %v981_v11  ;;  %v4176_v30 = vrot.slane %v4175_v55, 1  ;;  %v1539_v12 = vrot.slane %v1523_v14, 1  ;;  %v1540_v27 = vrot.slane %v1524_v49, 1  ;;  %v4190_v14 = vld [vmem:[#allocation52_spill] sm:$0xff]  ;;  %v4191_v1 = vld [vmem:[#allocation18_spill] sm:$0xff] }
 0x256   : > { %v1187_v60 = vadd.f32 %v4174_v3, %v1075_v28  ;;  %v1184_v45 = vadd.f32 %v4178_v13, %v1072_v42  ;;  %v962_v19 = vsel %vm839_vm2, %v955_v40, %v961_v62  ;;  %v964_v37 = vsel %vm839_vm2, %v956_v51, %v963_v18  ;;  %v4183_v51 = vld [vmem:[#allocation33_spill] sm:$0xff]  ;;  %v4188_v28 = vld [vmem:[#allocation30_spill] sm:$0xff]  ;;  %v4192_v42 = vld [vmem:[#allocation43_spill] sm:$0xff] }
 0x257   : > { %v1188_v59 = vadd.f32 %v4176_v30, %v1076_v7  ;;  %v1183_v38 = vadd.f32 %v4177_v10, %v1071_v33  ;;  %v983_v25 = vadd.f32 %v962_v19, %v870_v35  ;;  %v984_v16 = vadd.f32 %v964_v37, %v871_v26  ;;  %v4184_v35 = vld [vmem:[#allocation23_spill] sm:$0xff]  ;;  %v4194_v3 = vld [vmem:[#allocation41_spill] sm:$0xff] }
 0x258   : > { %v987_v23 = vadd.f32 %v961_v62, %v874_v43  ;;  %v988_v29 = vadd.f32 %v963_v18, %v875_v5  ;;  %v3829_v56 = vadd.f32 %v1539_v12, %v3686_v24  ;;  %v3832_v46 = vadd.f32 %v1540_v27, %v3717_v4  ;;  %v4186_v5 = vld [vmem:[#allocation24_spill] sm:$0xff]  ;;  %v4189_v4 = vld [vmem:[#allocation35_spill] sm:$0xff]  ;;  %v4193_v18 = vld [vmem:[#allocation17_spill] sm:$0xff] }
 0x259   : > { %v1296_v9 = vadd.f32 %v4179_v8, %v1184_v45  ;;  %v4181_v11 = vrot.slane %v4180_v48, 1  ;;  %v1073_v61 = vadd.f32 %v4182_v17, %v983_v25  ;;  %v1074_v31 = vadd.f32 %v4183_v51, %v984_v16  ;;  %v1477_v25 = vpop.permute.xlu1 %1476  ;;  %v4198_v16 = vld [vmem:[#allocation50_spill] sm:$0xff]  ;;  %v4200_v8 = vld [vmem:[#allocation21_spill] sm:$0xff] }
 0x25a   : > { %v4185_v26 = vrot.slane %v4184_v35, 1  ;;  %v4187_v6 = vrot.slane %v4186_v5, 1  ;;  %v1481_v49 = vsel %vm778_vm4, %v1469_v36, %v4190_v14  ;;  %v1483_v33 = vsel %vm778_vm4, %v4191_v1, %v1469_v36  ;;  %v4204_v35 = vld [vmem:[#allocation36_spill] sm:$0xff] }
 0x25b   : > { %v1300_v40 = vadd.f32 %v4181_v11, %v1188_v59  ;;  %v1415_v54 = vadd.f32 %v4188_v28, %v1296_v9  ;;  %v1185_v62 = vadd.f32 %v4192_v42, %v1073_v61  ;;  %v1186_v63 = vadd.f32 %v4193_v18, %v1074_v31  ;;  %v4196_v59 = vld [vmem:[#allocation45_spill] sm:$0xff]  ;;  %v1579_v31 = vpop.permute.xlu0 %1578 }
 0x25c   : > { %v1077_v43 = vadd.f32 %v4185_v26, %v987_v23  ;;  %v1078_v24 = vadd.f32 %v4187_v6, %v988_v29  ;;  %v4195_v55 = vrot.slane %v4194_v3, 1  ;;  %v4197_v10 = vrot.slane %v4196_v59, 1  ;;  %v4207_v3 = vld [vmem:[#allocation19_spill] sm:$0xff] }
 0x25d   : > { %v1419_v7 = vadd.f32 %v4189_v4, %v1300_v40  ;;  %v1527_v45 = vmul.f32 %v3724_v22, %v1483_v33  ;;  %v1528_v19 = vmul.f32 %v3727_v20, %v1481_v49  ;;  %v1478_v37 = vsel %vm778_vm4, %v3698_v0, %v1475_v2  ;;  %v4201_v40 = vld [vmem:[#allocation51_spill] sm:$0xff]  ;;  %v4203_v0 = vld [vmem:[#allocation48_spill] sm:$0xff] }
 0x25e   : > { %v1189_v30 = vadd.f32 %v4195_v55, %v1077_v43  ;;  %v1190_v13 = vadd.f32 %v4197_v10, %v1078_v24  ;;  %v1484_v36 = vsel %vm778_vm4, %v1475_v2, %v3674_v58  ;;  %v4199_v23 = vrot.slane %v4198_v16, 1  ;;  %v4205_v2 = vld [vmem:[#allocation34_spill] sm:$0xff]  ;;  %v4206_v4 = vld [vmem:[#allocation40_spill] sm:$0xff]  ;;  %v4210_v10 = vld [vmem:[#allocation37_spill] sm:$0xff] }
 0x25f   : > { %v1297_v9 = vadd.f32 %v4200_v8, %v1185_v62  ;;  %v1522_v48 = vmul.f32 %v3755_v52, %v1484_v36  ;;  %v1525_v22 = vmul.f32 %v3758_v34, %v1478_v37  ;;  %v1544_v11 = vrot.slane %v1527_v45, 1  ;;  %v4212_v45 = vld [vmem:[#allocation39_spill] sm:$0xff]  ;;  %v1587_v36 = vpop.permute.xlu0 %1586 }
 0x260   : > { %v1301_v29 = vadd.f32 %v4199_v23, %v1189_v30  ;;  %v1546_v20 = vrot.slane %v1528_v19, 1  ;;  %v4202_v17 = vrot.slane %v4201_v40, 1  ;;  %v1295_v51 = vadd.f32 %v4203_v0, %v1183_v38  ;;  %v4208_v30 = vld [vmem:[#allocation46_spill] sm:$0xff]  ;;  %v4213_v23 = vld [vmem:[#allocation53_spill] sm:$0xff] }
 0x261   : > { %v1416_v26 = vadd.f32 %v4205_v2, %v1297_v9  ;;  %v1538_v43 = vrot.slane %v1522_v48, 1  ;;  %v1541_v5 = vrot.slane %v1525_v22, 1  ;;  %v1545_v6 = vsel %vm839_vm2, %v1539_v12, %v1544_v11 }
 0x262   : > { %v1302_v61 = vadd.f32 %v4202_v17, %v1190_v13  ;;  %v1420_v58 = vadd.f32 %v4204_v35, %v1301_v29  ;;  %v1547_v24 = vsel %vm839_vm2, %v1540_v27, %v1546_v20  ;;  %v1571_v28 = vadd.f32 %v1544_v11, %v1419_v7  ;;  %v1581_v7 = vpop.permute.xlu1 %1580 }
 0x263   : > { %v3878_v33 = vadd.f32 %v1545_v6, %v1415_v54  ;;  %v3880_v42 = vadd.f32 %v1547_v24, %v1416_v26  ;;  %v1562_v38 = vadd.f32 %v1538_v43, %v3690_v32  ;;  %v1565_v18 = vadd.f32 %v1541_v5, %v3721_v21 }
 0x264   : > { %v1421_v49 = vadd.f32 %v4206_v4, %v1302_v61  ;;  %v3882_v62 = vadd.f32 %v1546_v20, %v1420_v58  ;;  %v1298_v55 = vadd.f32 %v4207_v3, %v1186_v63  ;;  %v4209_v59 = vrot.slane %v4208_v30, 1 }
 0x265   : > { %v1414_v27 = vadd.f32 %v4210_v10, %v1295_v51  ;;  %v1479_v54 = vsel %vm778_vm4, %v4190_v14, %v1477_v25  ;;  %v1485_v13 = vsel %vm778_vm4, %v1477_v25, %v4191_v1  ;;  %v1592_v32 = vsel %vm892_vm5, %v1579_v31, %v3752_v44 }
 0x266   : > { %v1299_v12 = vadd.f32 %v4209_v59, %v1187_v60  ;;  %v1594_v21 = vsel %vm892_vm5, %v3731_v39, %v1579_v31  ;;  %v4211_v60 = vld [vmem:[#allocation38_spill] sm:$0xff]  ;;  %v1526_v37 = vmul.f32 %v3755_v52, %v1485_v13  ;;  %v1529_v14 = vmul.f32 %v3758_v34, %v1479_v54  ;;  %v1589_v51 = vpop.permute.xlu1 %1588 }
 0x267   : > { %v1417_v63 = vadd.f32 %v4211_v60, %v1298_v55  ;;  %v1634_v16 = vmul.f32 %v3761_v15, %v1594_v21  ;;  %v1635_v1 = vmul.f32 %v3764_v57, %v1592_v32  ;;  %v1593_v25 = vsel %vm892_vm5, %v1581_v7, %v3672_v47 }
 0x268   : > { %v1418_v19 = vadd.f32 %v4212_v45, %v1299_v12  ;;  %v1595_v29 = vsel %vm892_vm5, %v4213_v23, %v1581_v7  ;;  %v1542_v8 = vrot.slane %v1526_v37, 1  ;;  %v1548_v9 = vrot.slane %v1529_v14, 1 }
 0x269   : > { %v1638_v48 = vmul.f32 %v3761_v15, %v1595_v29  ;;  %v1639_v52 = vmul.f32 %v3764_v57, %v1593_v25  ;;  %v1650_v34 = vrot.slane %v1634_v16, 1  ;;  %v1651_v22 = vrot.slane %v1635_v1, 1 }
 0x26a   : > { %v1590_v11 = vsel %vm892_vm5, %v3752_v44, %v1587_v36  ;;  %v1596_v20 = vsel %vm892_vm5, %v1587_v36, %v3731_v39  ;;  %v1543_v40 = vsel %vm839_vm2, %v1538_v43, %v1542_v8  ;;  %v1549_v17 = vsel %vm839_vm2, %v1541_v5, %v1548_v9 }
 0x26b   : > { %v1570_v61 = vadd.f32 %v1542_v8, %v1418_v19  ;;  %v1573_v0 = vadd.f32 %v1548_v9, %v1421_v49  ;;  %v1566_v15 = vadd.f32 %v1543_v40, %v1414_v27  ;;  %v1569_v31 = vadd.f32 %v1549_v17, %v1417_v63 }
 0x26c   : > { %v1674_v57 = vadd.f32 %v1650_v34, %v1562_v38  ;;  %v1675_v35 = vadd.f32 %v1651_v22, %v3829_v56  ;;  %v1654_v58 = vrot.slane %v1638_v48, 1  ;;  %v1656_v2 = vrot.slane %v1639_v52, 1 }
 0x26d   : > { %v1636_v44 = vmul.f32 %v3775_v53, %v1590_v11  ;;  %v1637_v26 = vmul.f32 %v3778_v41, %v1596_v20  ;;  %v1591_v39 = vsel %vm892_vm5, %v3672_v47, %v1589_v51  ;;  %v1597_v4 = vsel %vm892_vm5, %v1589_v51, %v4213_v23 }
 0x26e   : > { %v1686_v6 = vmax.f32 %v1674_v57, 0.0  ;;  %v1655_v43 = vsel %vm839_vm2, %v1650_v34, %v1654_v58  ;;  %v1682_v5 = vadd.f32 %v1654_v58, %v1570_v61  ;;  %v1683_v24 = vadd.f32 %v1656_v2, %v1571_v28 }
 0x26f   : > { %v1687_v56 = vmax.f32 %v1675_v35, 0.0  ;;  %v1657_v49 = vsel %vm839_vm2, %v1651_v22, %v1656_v2  ;;  %v1678_v38 = vadd.f32 %v1655_v43, %v1566_v15  ;;  %v1652_v3 = vrot.slane %v1636_v44, 1 }
 0x270   : > { %v1698_v55 = vmin.f32 %v1686_v6, 6.0  ;;  %v1695_v30 = vmax.f32 %v1683_v24, 0.0  ;;  %v1653_v59 = vrot.slane %v1637_v26, 1  ;;  %v1640_v12 = vmul.f32 %v3775_v53, %v1591_v39 }
 0x271   : > { %v1690_v10 = vmax.f32 %v1678_v38, 0.0  ;;  %v1694_v47 = vmax.f32 %v1682_v5, 0.0  ;;  %v1676_v27 = vadd.f32 %v1652_v3, %v3832_v46  ;;  %v1641_v28 = vmul.f32 %v3778_v41, %v1597_v4 }
 0x272   : > { %v1707_v7 = vmin.f32 %v1695_v30, 6.0  ;;  %v1677_v54 = vadd.f32 %v1653_v59, %v1565_v18  ;;  %v1658_v50 = vrot.slane %v1640_v12, 1  ;;  %v1679_v60 = vadd.f32 %v1657_v49, %v3878_v33  ;;  %v2108_v30 = vld [vmem:[%s4014_s6] ss:$0 sm:$0xff] }
 0x273   : > { %v1702_v13 = vmin.f32 %v1690_v10, 6.0  ;;  %v1688_v32 = vmax.f32 %v1676_v27, 0.0  ;;  %v1660_v21 = vrot.slane %v1641_v28, 1  ;;  %v1699_v63 = vmin.f32 %v1687_v56, 6.0  ;;  %v2410_v28 = vld [vmem:[%s2860_s10] sm:$0xff] }
 0x274   : > { %v1786_v45 = vrot.slane %v1698_v55, 7  ;;  %v1659_v19 = vsel %vm839_vm2, %v1652_v3, %v1658_v50  ;;  %v1684_v53 = vadd.f32 %v1658_v50, %v3882_v62  ;;  %v1706_v37 = vmin.f32 %v1694_v47, 6.0 }
 0x275   : > { %v1661_v14 = vsel %vm839_vm2, %v1653_v59, %v1660_v21  ;;  %v1680_v46 = vadd.f32 %v1659_v19, %v3880_v42  ;;  %v1685_v41 = vadd.f32 %v1660_v21, %v1573_v0  ;;  %v1689_v36 = vmax.f32 %v1677_v54, 0.0 }
 0x276   : > { %v1696_v18 = vmax.f32 %v1684_v53, 0.0  ;;  %v1691_v16 = vmax.f32 %v1679_v60, 0.0  ;;  %v1787_v1 = vrot.slane %v1702_v13, 7  ;;  %v1700_v25 = vmin.f32 %v1688_v32, 6.0  ;;  %v2411_v13 = vld [vmem:[%s2860_s10 + $0x8] sm:$0xff] }
 0x277   : > { %v1692_v23 = vmax.f32 %v1680_v46, 0.0  ;;  %v1697_v29 = vmax.f32 %v1685_v41, 0.0  ;;  %v1800_v33 = vrot.slane %v1707_v7, 7  ;;  %v1681_v52 = vadd.f32 %v1661_v14, %v1569_v31 }
 0x278   : > { %v1708_v8 = vmin.f32 %v1696_v18, 6.0  ;;  %v1703_v9 = vmin.f32 %v1691_v16, 6.0  ;;  %v1788_v48 = vsel %vm731_vm1, %v1786_v45, %v1787_v1  ;;  %v1789_v22 = vrot.slane %v1699_v63, 7 }
 0x279   : > { %v1704_v62 = vmin.f32 %v1692_v23, 6.0  ;;  %v1709_v34 = vmin.f32 %v1697_v29, 6.0  ;;  %v1798_v11 = vrot.slane %v1706_v37, 7  ;;  %v1701_v20 = vmin.f32 %v1689_v36, 6.0 }
 0x27a   : > { %v1790_v42 = vrot.slane %v1703_v9, 7  ;;  %v1693_v40 = vmax.f32 %v1681_v52, 0.0  ;;  %v1802_v17 = vrot.slane %v1708_v8, 7  ;;  %v1792_v61 = vrot.slane %v1700_v25, 7 }
 0x27b   : > { %v1799_v0 = vsel %vm731_vm1, %v1787_v1, %v1798_v11  ;;  %v1793_v51 = vrot.slane %v1704_v62, 7  ;;  %v1804_v58 = vrot.slane %v1709_v34, 7  ;;  %v1795_v44 = vrot.slane %v1701_v20, 7 }
 0x27c   : > { %v1791_v15 = vsel %vm731_vm1, %v1789_v22, %v1790_v42  ;;  %v1801_v57 = vsel %vm731_vm1, %v1790_v42, %v1800_v33  ;;  %v1705_v35 = vmin.f32 %v1693_v40, 6.0 }
 0x27d   : > { %1878 = vmatprep.mubr.f32.mxu0 %v1791_v15  ;;  %v1794_v31 = vsel %vm731_vm1, %v1792_v61, %v1793_v51  ;;  %v1803_v2 = vsel %vm731_vm1, %v1793_v51, %v1802_v17 }
 0x27e   : > { %1879 = vmatmul.mubr.f32.vlgmr.msra.gmra.mrb[4].mxu0 %v1788_v48  ;;  %v1796_v26 = vrot.slane %v1705_v35, 7 }
 0x27f   : > { %1883 = vmatprep.mubr.f32.mxu0 %v1801_v57 }
 0x280   : > { %v1797_v6 = vsel %vm731_vm1, %v1795_v44, %v1796_v26  ;;  %v1805_v39 = vsel %vm731_vm1, %v1796_v26, %v1804_v58 }
 0x281   : > { %1953 = vmatprep.mubr.f32.mxu1 %v1797_v6 }
 0x282   : > { %1884 = vmatmul.mubr.f32.gmra.mrb[6].mxu0 %v1799_v0  ;;  %1954 = vmatmul.mubr.f32.vlgmr.msra.gmra.mrb[4].mxu1 %v1794_v31 }
 0x283   : > { %1958 = vmatprep.mubr.f32.mxu1 %v1805_v39 }
 0x286   : > { %1959 = vmatmul.mubr.f32.gmra.mrb[6].mxu1 %v1803_v2 }
 0x351   : > { %v2148_v43 = vpop.f32.mrb[4].mxu0 }
 0x352   : > { %v2149_v5 = vpop.f32.mrb[5].mxu0 }
 0x353   : > { %v2150_v24 = vadd.f32 %v2149_v5, %v2148_v43 }
 0x355   : > { %v2151_v4 = vpop.f32.mrb[6].mxu0  ;;  %v2186_v56 = vpop.f32.mrb[4].mxu1 }
 0x356   : > { %v2152_v49 = vpop.f32.mrb[7].mxu0  ;;  %v2187_v38 = vpop.f32.mrb[5].mxu1 }
 0x357   : > { %v2153_v3 = vadd.f32 %v2152_v49, %v2151_v4  ;;  %v2188_v55 = vadd.f32 %v2187_v38, %v2186_v56 }
 0x359   : > { %v1956_v59 = vadd.f32 %v2188_v55, %v2150_v24  ;;  %v2189_v12 = vpop.f32.mrb[6].mxu1 }
 0x35a   : > { %v2190_v10 = vpop.f32.mrb[7].mxu1 }
 0x35b   : > { %v1971_v47 = vadd.f32 %v2108_v30, %v1956_v59  ;;  %v2191_v27 = vadd.f32 %v2190_v10, %v2189_v12 }
 0x35d   : > { %v1973_v7 = vadd.f32 %v2410_v28, %v1971_v47  ;;  %v1961_v54 = vadd.f32 %v2191_v27, %v2153_v3 }
 0x35f   : > { %1975 = vst [vmem:[%s340_s21] sm:$0xff] %v1973_v7  ;;  %v1972_v50 = vadd.f32 %v2108_v30, %v1961_v54 }
 0x361   : > { %v1974_v32 = vadd.f32 %v2411_v13, %v1972_v50 }
 0x363   : > { %1976 = vst [vmem:[%s340_s21 + $0x8] sm:$0xff] %v1974_v32 }
 0x364   : > { %2539 = shalt.err (!%p2536_p4)
}
 0x365   : > { %s2540_s10 = scalar_lea.hbm %s3961_s9, 256  ;;  %s2544_s19 = scalar_lea.hbm %s4015_s7, 512 }
 0x366   : > { %p2541_p9 = scmp.ne.s32.totalorder %s3961_s9, %s2540_s10  ;;  %p2545_p8 = scmp.lt.u32.totalorder %s3961_s9, %s4015_s7 }
 0x367   : > { %p2546_p13 = scmp.lt.u32.totalorder %s2544_s19, %s2540_s10  ;;  %p2548_p10 = scmp.lt.u32.totalorder %s2540_s10, %s3961_s9 }
 0x368   : > { %p2542_p0 = pnand %p2541_p9, %p2803_p5 }
 0x369   : > { %p2547_p6 = por %p2546_p13, %p2545_p8 }
 0x36a   : > { %p2543_p11 = pneg %p2542_p0 }
 0x36b   : > { %p2549_p3 = por %p2548_p10, %p2547_p6 }
 0x36d   : > { %p2550_p7 = pnand %p2549_p3, %p2543_p11 }
 0x36f   : > { %2553 = shalt.err (!%p2550_p7)
}
 0x370   : > { %s2616_s14 = smov 128   ;;  %s2617_s30 = smov 8  }
 0x371   : > { %2334 = dma.vmem_to_hbm [thread:$0]  (%p2803_p5), %s3963_s17, 256, %s3961_s9, %s1978_s29, %s2616_s14, %s2616_s14, %s2617_s30  }
 0x372 PF: > { %s2006_s22 = sand.u32 1, %s2588_s24   ;;  %p4214_p12 = scmp.ne.s32.totalorder %s4068_s8, 0 }
 0x373   : > { %p4215_p2 = scmp.ge.s32.totalorder %s2600_s27, 2  ;;  %s2007_s28 = scalar_lea.sflag [#allocation5], %s2006_s22 }
 0x375   : > { %p2351_p1 = pnand %p4215_p2, %p4214_p12 }
 0x377   : > { %2583 = dma.done.wait (!%p2351_p1), %s2007_s28, 256  }
 0x378   : > { %2585 = vsyncadd (!%p2351_p1), %s2007_s28, 4294967040  ;;  %p22_p4 = scmp.ge.s32.totalorder %s2789_s13, 4   ;;  %s4216_s24 = smov %s2592_s25 }
 0x379   : > { %s4217_s25 = smov %s2596_s26  ;;  %s4218_s26 = smov %s2799_s18 }
 0x37a   : > { %s4219_s27 = smov %s2789_s13  ;;  %24 = sbr.rel (!%p22_p4) target bundleno = 9 (0x9), region = 107 }
 0x381   :  { %2012 = vsyncpa [#allocation4], 1 }
 0x382   :  { %2014 = vsyncpa [#allocation4 + $0x1], 1 }
 0x383   :  { %2015 = vsyncpa [#allocation7], 1 }
 0x384   :  { %2016 = vsyncpa [#allocation10], 1 }
 0x385   :  { %2017 = vsyncpa [#allocation5], 1 }
 0x386   :  { %2019 = vsyncpa [#allocation5 + $0x1], 1 }

</bundles_post_ra>
